<compile_context>
chip_gen: v7x
topology: tpu7x:2x2x1
jax: 0.10.0
libtpu: 0.0.40
codegen_flags: <defaults>
</compile_context>

<pallas_src>
import jax
import jax.numpy as jnp
from jax.experimental import pallas as pl
from jax.experimental.pallas import tpu as pltpu


def _round_up(x, m):
    return ((x + m - 1) // m) * m


def _choose_chunk(rows_per_step, max_rows):
    """Largest multiple of 128 that divides rows_per_step and is <= max_rows."""
    best = 128
    ch = 128
    limit = min(rows_per_step, max(max_rows, 128))
    while ch <= limit:
        if rows_per_step % ch == 0:
            best = ch
        ch += 128
    return best


# ---------------------------------------------------------------------------
# Fused kernel: conv3x3 (as im2col matmul) + ReLU + masked GAP + 2-layer MLP
# ---------------------------------------------------------------------------
def image_to_points_fused(x_col, pool, w_conv, w1, w2, biases, *,
                          TB, HWp, HW, chunk_rows):
    """
    x_col : [B_pad*HWp, Kp] bf16  im2col patches (K and row padding are zeros)
    pool  : [TB, TB*HWp]    bf16  0/1 masked-average-pool matrix (per step)
    w_conv: [Kp, Fp]        bf16
    w1    : [Fp, Hd]        bf16
    w2    : [Hd, Op]        bf16
    biases: [1, Fp+Hd+Op]   f32   (b_conv | b1 | b2, each zero-padded)
    returns [B_pad, Op] f32
    """
    BHW, Kp = x_col.shape
    Fp = w_conv.shape[1]
    Hd = w1.shape[1]
    Op = w2.shape[1]
    B_pad = BHW // HWp
    n_b = B_pad // TB
    rows_per_step = TB * HWp
    CH = _choose_chunk(rows_per_step, chunk_rows)
    assert rows_per_step % CH == 0
    n_r = rows_per_step // CH
    inv_hw = 1.0 / float(HW)

    def kernel(x_ref, pool_ref, wc_ref, w1_ref, w2_ref, b_ref, o_ref,
               feat_acc):
        r = pl.program_id(1)

        @pl.when(r == 0)
        def _init():
            feat_acc[...] = jnp.zeros_like(feat_acc)

        # --- 3x3 conv on this row chunk: single MXU matmul (CH,Kp)@(Kp,Fp) ---
        fmap = jnp.dot(x_ref[...], wc_ref[...],
                       preferred_element_type=jnp.float32)
        fmap = jnp.maximum(fmap + b_ref[:, 0:Fp], 0.0).astype(jnp.bfloat16)

        # --- masked global-average-pool partial sum, also on the MXU -------
        feat_acc[...] += jnp.dot(pool_ref[...], fmap,
                                 preferred_element_type=jnp.float32)

        # --- on the last spatial chunk: scale + point-generator MLP --------
        @pl.when(r == n_r - 1)
        def _finish():
            feat = (feat_acc[...] * inv_hw).astype(jnp.bfloat16)      # (TB,Fp)
            h = jnp.dot(feat, w1_ref[...],
                        preferred_element_type=jnp.float32)
            h = jnp.maximum(h + b_ref[:, Fp:Fp + Hd], 0.0).astype(jnp.bfloat16)
            y = jnp.dot(h, w2_ref[...],
                        preferred_element_type=jnp.float32)
            y = y + b_ref[:, Fp + Hd:Fp + Hd + Op]
            o_ref[...] = y.astype(o_ref.dtype)                        # (TB,Op)

    out = pl.pallas_call(
        kernel,
        out_shape=jax.ShapeDtypeStruct((B_pad, Op), jnp.float32),
        grid_spec=pltpu.PrefetchScalarGridSpec(
            num_scalar_prefetch=0,
            grid=(n_b, n_r),
            in_specs=[
                pl.BlockSpec((CH, Kp), lambda b, r: (b * n_r + r, 0)),   # x
                pl.BlockSpec((TB, CH), lambda b, r: (0, r)),             # pool
                pl.BlockSpec((Kp, Fp), lambda b, r: (0, 0)),             # conv W
                pl.BlockSpec((Fp, Hd), lambda b, r: (0, 0)),             # w1
                pl.BlockSpec((Hd, Op), lambda b, r: (0, 0)),             # w2
                pl.BlockSpec((1, Fp + Hd + Op), lambda b, r: (0, 0)),    # biases
            ],
            out_specs=pl.BlockSpec((TB, Op), lambda b, r: (b, 0)),
            scratch_shapes=[pltpu.VMEM((TB, Fp), jnp.float32)],
        ),
        compiler_params=pltpu.CompilerParams(
            dimension_semantics=("parallel", "arbitrary")),
    )(x_col, pool, w_conv, w1, w2, biases)
    return out


# ---------------------------------------------------------------------------
# Module wrapper
# ---------------------------------------------------------------------------
class ImageToPointCloudPallas:
    TB = 8  # images per grid step (8 sublanes for GAP / MLP / output store)

    def __init__(self, *, in_ch=3, feat_dim=32, hidden=64, num_points=8,
                 seed=0, chunk_rows=1024):
        self.in_ch = in_ch
        self.feat_dim = feat_dim
        self.hidden = hidden
        self.num_points = num_points
        self.chunk_rows = chunk_rows

        # TPU-friendly padded dims (lane-dense everywhere)
        self.Kp = _round_up(9 * in_ch, 128)
        self.Fp = _round_up(feat_dim, 128)
        self.Hd = _round_up(hidden, 128)
        self.Op = _round_up(num_points * 3, 128)

        k = jax.random.PRNGKey(seed)
        k1, k2, k3, k4, k5, k6 = jax.random.split(k, 6)

        # encoder conv: PyTorch layout [F, C, 3, 3] -> im2col layout
        # (kh, kw, C, F) -> (9C, F), zero pad to (Kp, Fp), bf16.
        w_conv = jax.random.normal(k1, (feat_dim, in_ch, 3, 3),
                                   jnp.float32) * 0.1
        wc_flat = jnp.transpose(w_conv, (2, 3, 1, 0)).reshape(9 * in_ch,
                                                              feat_dim)
        b_conv = jax.random.normal(k2, (feat_dim,), jnp.float32) * 0.01

        # point generator MLP: feat_dim -> hidden -> num_points*3
        w1 = jax.random.normal(k3, (feat_dim, hidden), jnp.float32) * 0.1
        b1 = jax.random.normal(k4, (hidden,), jnp.float32) * 0.01
        w2 = jax.random.normal(k5, (hidden, num_points * 3), jnp.float32) * 0.1
        b2 = jax.random.normal(k6, (num_points * 3,), jnp.float32) * 0.01

        # unpadded f32 copies (pure-JAX reference)
        self._wc_f32, self._bc_f32 = wc_flat, b_conv
        self._w1_f32, self._b1_f32 = w1, b1
        self._w2_f32, self._b2_f32 = w2, b2

        # padded bf16 kernel weights
        self.w_conv = jnp.pad(wc_flat, ((0, self.Kp - 9 * in_ch),
                                        (0, self.Fp - feat_dim))
                              ).astype(jnp.bfloat16)
        self.w1 = jnp.pad(w1, ((0, self.Fp - feat_dim),
                               (0, self.Hd - hidden))).astype(jnp.bfloat16)
        self.w2 = jnp.pad(w2, ((0, self.Hd - hidden),
                               (0, self.Op - num_points * 3))
                          ).astype(jnp.bfloat16)
        # all three biases in a single lane-dense (1, Fp+Hd+Op) f32 row
        self.biases = jnp.concatenate([
            jnp.pad(b_conv, (0, self.Fp - feat_dim)),
            jnp.pad(b1, (0, self.Hd - hidden)),
            jnp.pad(b2, (0, self.Op - num_points * 3)),
        ]).reshape(1, self.Fp + self.Hd + self.Op)

    # -- host-side data prep: im2col (tap stacking), bf16, padding -----------
    def _prep_image(self, x):
        B, C, H, W = x.shape
        assert C == self.in_ch
        HW = H * W
        HWp = _round_up(HW, 128)
        B_pad = _round_up(B, self.TB)

        x_nhwc = jnp.transpose(x, (0, 2, 3, 1))
        xp = jnp.pad(x_nhwc, ((0, 0), (1, 1), (1, 1), (0, 0)))  # conv pad=1
        taps = [xp[:, dh:dh + H, dw:dw + W, :]
                for dh in range(3) for dw in range(3)]
        x_col = jnp.concatenate(taps, axis=-1).reshape(B, HW, 9 * C)
        x_col = jnp.pad(x_col, ((0, B_pad - B), (0, HWp - HW),
                                (0, self.Kp - 9 * C)))
        x_col = x_col.reshape(B_pad * HWp, self.Kp).astype(jnp.bfloat16)

        # masked average-pool matrix for one grid step (TB images): 0/1 in
        # bf16; the 1/(H*W) scale is applied in f32 inside the kernel.
        t = jnp.arange(self.TB)[:, None]
        j = jnp.arange(self.TB * HWp)[None, :]
        pool = ((j // HWp == t) & (j % HWp < HW)).astype(jnp.bfloat16)
        return x_col, pool, HWp, HW, B_pad

    def forward(self, batch):
        x = batch['image']                       # NCHW (PyTorch convention)
        B = x.shape[0]
        x_col, pool, HWp, HW, _ = self._prep_image(x)
        y = image_to_points_fused(x_col, pool, self.w_conv, self.w1, self.w2,
                                  self.biases, TB=self.TB, HWp=HWp, HW=HW,
                                  chunk_rows=self.chunk_rows)
        points = y[:B, :self.num_points * 3].reshape(B, self.num_points, 3)
        return {'points': points}

    # -- pure-JAX f32 reference (same synthetic weights) ---------------------
    def reference_forward(self, x):
        B, C, H, W = x.shape
        xn = jnp.transpose(x, (0, 2, 3, 1)).astype(jnp.float32)
        xp = jnp.pad(xn, ((0, 0), (1, 1), (1, 1), (0, 0)))
        taps = [xp[:, dh:dh + H, dw:dw + W, :]
                for dh in range(3) for dw in range(3)]
        xc = jnp.concatenate(taps, axis=-1).reshape(B, H * W, 9 * C)
        fm = jnp.maximum(jnp.einsum('bpk,kf->bpf', xc, self._wc_f32)
                         + self._bc_f32, 0.0)
        feat = jnp.mean(fm, axis=1)
        h = jnp.maximum(feat @ self._w1_f32 + self._b1_f32, 0.0)
        y = h @ self._w2_f32 + self._b2_f32
        return y.reshape(B, self.num_points, 3)


if __name__ == "__main__":
    key = jax.random.PRNGKey(0)
    # B=16 -> 2 parallel grid steps of 8 images (keeps both v7x TCs busy);
    # chunk_rows=1024 -> 2 spatial chunks per step (exercises the GAP
    # accumulation / pl.when finalize path).
    B, C, H, W = 16, 3, 16, 16
    image = jax.random.normal(key, (B, C, H, W), jnp.float32)

    model = ImageToPointCloudPallas(in_ch=C, feat_dim=32, hidden=64,
                                    num_points=8, seed=0, chunk_rows=1024)
    out = model.forward({'image': image})
    pts = jax.block_until_ready(out['points'])
    assert pts.shape == (B, 8, 3), pts.shape
    assert bool(jnp.all(jnp.isfinite(pts)))

    ref = model.reference_forward(image)
    err = float(jnp.max(jnp.abs(pts - ref)))
    assert err < 5e-2, f"max abs error vs f32 reference: {err}"
    print("KERNEL_OK")
</pallas_src>

<mosaic_0001>
module attributes {stable_mosaic.version = 11 : i64} {
  func.func @kernel(%arg0: i32, %arg1: i32, %arg2: memref<1024x128xbf16, #tpu.memory_space<vmem>>, %arg3: memref<8x1024xbf16, #tpu.memory_space<vmem>>, %arg4: memref<128x128xbf16, #tpu.memory_space<vmem>>, %arg5: memref<128x128xbf16, #tpu.memory_space<vmem>>, %arg6: memref<128x128xbf16, #tpu.memory_space<vmem>>, %arg7: memref<1x384xf32, #tpu.memory_space<vmem>>, %arg8: memref<8x128xf32, #tpu.memory_space<vmem>>, %arg9: memref<8x128xf32, #tpu.memory_space<vmem>>) attributes {dimension_semantics = [#tpu.dimension_semantics<parallel>, #tpu.dimension_semantics<arbitrary>], iteration_bounds = array<i64: 2, 2>, scalar_prefetch = 0 : i64, scratch_operands = 1 : i64, tpu.core_type = #tpu.core_type<tc>, window_params = [{transform_indices = @transform_0, window_bounds = array<i64: 1024, 128>}, {transform_indices = @transform_1, window_bounds = array<i64: 8, 1024>}, {pipeline_mode = #tpu.pipeline_mode<synchronous>, transform_indices = @transform_2, window_bounds = array<i64: 128, 128>}, {pipeline_mode = #tpu.pipeline_mode<synchronous>, transform_indices = @transform_3, window_bounds = array<i64: 128, 128>}, {pipeline_mode = #tpu.pipeline_mode<synchronous>, transform_indices = @transform_4, window_bounds = array<i64: 128, 128>}, {pipeline_mode = #tpu.pipeline_mode<synchronous>, transform_indices = @transform_5, window_bounds = array<i64: 1, 384>}, {transform_indices = @transform_6, window_bounds = array<i64: 8, 128>}]} {
    %c0_i32 = arith.constant 0 : i32
    %0 = arith.cmpi eq, %arg1, %c0_i32 : i32
    %1 = arith.extui %0 : i1 to i32
    %c0_i32_0 = arith.constant 0 : i32
    %2 = arith.cmpi ne, %1, %c0_i32_0 : i32
    scf.if %2 {
      %cst_15 = arith.constant 0.000000e+00 : f32
      %20 = vector.broadcast %cst_15 : f32 to vector<8x128xf32>
      %c0_16 = arith.constant 0 : index
      %c0_17 = arith.constant 0 : index
      %21 = vector.load %arg9[%c0_16, %c0_17] : memref<8x128xf32, #tpu.memory_space<vmem>>, vector<8x128xf32>
      tpu.vector_store %arg9[%c0_16, %c0_17], %20 {strides = array<i32>} : memref<8x128xf32, #tpu.memory_space<vmem>>, vector<8x128xf32>,
    } else {
    }
    %c0 = arith.constant 0 : index
    %c0_1 = arith.constant 0 : index
    %3 = vector.load %arg2[%c0, %c0_1] : memref<1024x128xbf16, #tpu.memory_space<vmem>>, vector<1024x128xbf16>
    %c0_2 = arith.constant 0 : index
    %c0_3 = arith.constant 0 : index
    %4 = vector.load %arg4[%c0_2, %c0_3] : memref<128x128xbf16, #tpu.memory_space<vmem>>, vector<128x128xbf16>
    %cst = arith.constant dense<0.000000e+00> : vector<1024x128xf32>
    %5 = tpu.matmul %3, %4, %cst {dimension_numbers = #tpu.dot_dimension_numbers<[1], [0], [0], [1], [0, 0, 1, 1], [], []>} : vector<1024x128xbf16>, vector<128x128xbf16>, vector<1024x128xf32> -> vector<1024x128xf32>
    %c0_4 = arith.constant 0 : index
    %c0_5 = arith.constant 0 : index
    %6 = vector.load %arg7[%c0_4, %c0_5] : memref<1x384xf32, #tpu.memory_space<vmem>>, vector<1x128xf32>
    %7 = vector.broadcast %6 : vector<1x128xf32> to vector<1024x128xf32>
    %8 = arith.addf %5, %7 : vector<1024x128xf32>
    %cst_6 = arith.constant 0.000000e+00 : f32
    %9 = vector.broadcast %cst_6 : f32 to vector<1024x128xf32>
    %10 = arith.maximumf %8, %9 : vector<1024x128xf32>
    %11 = arith.truncf %10 : vector<1024x128xf32> to vector<1024x128xbf16>
    %c0_7 = arith.constant 0 : index
    %c0_8 = arith.constant 0 : index
    %12 = vector.load %arg9[%c0_7, %c0_8] : memref<8x128xf32, #tpu.memory_space<vmem>>, vector<8x128xf32>
    %c0_9 = arith.constant 0 : index
    %c0_10 = arith.constant 0 : index
    %13 = vector.load %arg3[%c0_9, %c0_10] : memref<8x1024xbf16, #tpu.memory_space<vmem>>, vector<8x1024xbf16>
    %cst_11 = arith.constant dense<0.000000e+00> : vector<8x128xf32>
    %14 = tpu.matmul %13, %11, %cst_11 {dimension_numbers = #tpu.dot_dimension_numbers<[1], [0], [0], [1], [0, 0, 1, 1], [], []>} : vector<8x1024xbf16>, vector<1024x128xbf16>, vector<8x128xf32> -> vector<8x128xf32>
    %15 = arith.addf %12, %14 : vector<8x128xf32>
    %c0_12 = arith.constant 0 : index
    %c0_13 = arith.constant 0 : index
    %16 = vector.load %arg9[%c0_12, %c0_13] : memref<8x128xf32, #tpu.memory_space<vmem>>, vector<8x128xf32>
    tpu.vector_store %arg9[%c0_12, %c0_13], %15 {strides = array<i32>} : memref<8x128xf32, #tpu.memory_space<vmem>>, vector<8x128xf32>,
    %c1_i32 = arith.constant 1 : i32
    %17 = arith.cmpi eq, %arg1, %c1_i32 : i32
    %18 = arith.extui %17 : i1 to i32
    %c0_i32_14 = arith.constant 0 : i32
    %19 = arith.cmpi ne, %18, %c0_i32_14 : i32
    scf.if %19 {
      %c0_15 = arith.constant 0 : index
      %c0_16 = arith.constant 0 : index
      %20 = vector.load %arg9[%c0_15, %c0_16] : memref<8x128xf32, #tpu.memory_space<vmem>>, vector<8x128xf32>
      %cst_17 = arith.constant 3.906250e-03 : f32
      %21 = vector.broadcast %cst_17 : f32 to vector<8x128xf32>
      %22 = arith.mulf %20, %21 : vector<8x128xf32>
      %23 = arith.truncf %22 : vector<8x128xf32> to vector<8x128xbf16>
      %c0_18 = arith.constant 0 : index
      %c0_19 = arith.constant 0 : index
      %24 = vector.load %arg5[%c0_18, %c0_19] : memref<128x128xbf16, #tpu.memory_space<vmem>>, vector<128x128xbf16>
      %cst_20 = arith.constant dense<0.000000e+00> : vector<8x128xf32>
      %25 = tpu.matmul %23, %24, %cst_20 {dimension_numbers = #tpu.dot_dimension_numbers<[1], [0], [0], [1], [0, 0, 1, 1], [], []>} : vector<8x128xbf16>, vector<128x128xbf16>, vector<8x128xf32> -> vector<8x128xf32>
      %c0_21 = arith.constant 0 : index
      %c128 = arith.constant 128 : index
      %26 = vector.load %arg7[%c0_21, %c128] : memref<1x384xf32, #tpu.memory_space<vmem>>, vector<1x128xf32>
      %27 = vector.broadcast %26 : vector<1x128xf32> to vector<8x128xf32>
      %28 = arith.addf %25, %27 : vector<8x128xf32>
      %cst_22 = arith.constant 0.000000e+00 : f32
      %29 = vector.broadcast %cst_22 : f32 to vector<8x128xf32>
      %30 = arith.maximumf %28, %29 : vector<8x128xf32>
      %31 = arith.truncf %30 : vector<8x128xf32> to vector<8x128xbf16>
      %c0_23 = arith.constant 0 : index
      %c0_24 = arith.constant 0 : index
      %32 = vector.load %arg6[%c0_23, %c0_24] : memref<128x128xbf16, #tpu.memory_space<vmem>>, vector<128x128xbf16>
      %cst_25 = arith.constant dense<0.000000e+00> : vector<8x128xf32>
      %33 = tpu.matmul %31, %32, %cst_25 {dimension_numbers = #tpu.dot_dimension_numbers<[1], [0], [0], [1], [0, 0, 1, 1], [], []>} : vector<8x128xbf16>, vector<128x128xbf16>, vector<8x128xf32> -> vector<8x128xf32>
      %c0_26 = arith.constant 0 : index
      %c256 = arith.constant 256 : index
      %34 = vector.load %arg7[%c0_26, %c256] : memref<1x384xf32, #tpu.memory_space<vmem>>, vector<1x128xf32>
      %35 = vector.broadcast %34 : vector<1x128xf32> to vector<8x128xf32>
      %36 = arith.addf %33, %35 : vector<8x128xf32>
      %c0_27 = arith.constant 0 : index
      %c0_28 = arith.constant 0 : index
      %37 = vector.load %arg8[%c0_27, %c0_28] : memref<8x128xf32, #tpu.memory_space<vmem>>, vector<8x128xf32>
      tpu.vector_store %arg8[%c0_27, %c0_28], %36 {strides = array<i32>} : memref<8x128xf32, #tpu.memory_space<vmem>>, vector<8x128xf32>,
    } else {
    }
    return
  }
  func.func @transform_0(%arg0: i32, %arg1: i32) -> (i32, i32) {
    %c2_i32 = arith.constant 2 : i32
    %0 = arith.muli %arg0, %c2_i32 : i32
    %1 = arith.addi %0, %arg1 : i32
    %c0_i32 = arith.constant 0 : i32
    %c0_i32_0 = arith.constant 0 : i32
    return %1, %c0_i32 : i32, i32
  }
  func.func @transform_1(%arg0: i32, %arg1: i32) -> (i32, i32) {
    %c0_i32 = arith.constant 0 : i32
    %c0_i32_0 = arith.constant 0 : i32
    return %c0_i32, %arg1 : i32, i32
  }
  func.func @transform_2(%arg0: i32, %arg1: i32) -> (i32, i32) {
    %c0_i32 = arith.constant 0 : i32
    %c0_i32_0 = arith.constant 0 : i32
    %c0_i32_1 = arith.constant 0 : i32
    return %c0_i32, %c0_i32_0 : i32, i32
  }
  func.func @transform_3(%arg0: i32, %arg1: i32) -> (i32, i32) {
    %c0_i32 = arith.constant 0 : i32
    %c0_i32_0 = arith.constant 0 : i32
    %c0_i32_1 = arith.constant 0 : i32
    return %c0_i32, %c0_i32_0 : i32, i32
  }
  func.func @transform_4(%arg0: i32, %arg1: i32) -> (i32, i32) {
    %c0_i32 = arith.constant 0 : i32
    %c0_i32_0 = arith.constant 0 : i32
    %c0_i32_1 = arith.constant 0 : i32
    return %c0_i32, %c0_i32_0 : i32, i32
  }
  func.func @transform_5(%arg0: i32, %arg1: i32) -> (i32, i32) {
    %c0_i32 = arith.constant 0 : i32
    %c0_i32_0 = arith.constant 0 : i32
    %c0_i32_1 = arith.constant 0 : i32
    return %c0_i32, %c0_i32_0 : i32, i32
  }
  func.func @transform_6(%arg0: i32, %arg1: i32) -> (i32, i32) {
    %c0_i32 = arith.constant 0 : i32
    %c0_i32_0 = arith.constant 0 : i32
    return %arg0, %c0_i32 : i32, i32
  }
}

</mosaic_0001>

<bundles_post_ra>
// kernel: tpu_custom_call.1
= control target key start
LH: loop header
LB: loop body
LE: loop exit
PB: predicated region body
PF: predicated region fallthrough
CT: control target
= control target key end

     0   :  { %s4180_s0 = inlined_call_operand.hbm [shape: bf16[4096,128], index: 0, kind: input, shape index: {}]   ;;  %s4181_s1 = inlined_call_operand.hbm [shape: bf16[8,2048], index: 1, kind: input, shape index: {}]   ;;  %s4182_s2 = inlined_call_operand.hbm [shape: bf16[128,128], index: 2, kind: input, shape index: {}]   ;;  %s4183_s3 = inlined_call_operand.hbm [shape: bf16[128,128], index: 3, kind: input, shape index: {}]   ;;  %s4184_s4 = inlined_call_operand.hbm [shape: bf16[128,128], index: 4, kind: input, shape index: {}]   ;;  %s4185_s5 = inlined_call_operand.vmem [shape: f32[1,384], index: 5, kind: input, shape index: {}]   ;;  %s4186_s6 = inlined_call_operand.hbm [shape: f32[16,128], index: 6, kind: output, shape index: {}]  }
   0x1   :  { %4206 = sst [smem:[#allocation26_spill]] %s4182_s2 }
   0x2   :  { %4207 = sst [smem:[#allocation27_spill]] %s4183_s3 }
   0x3   :  { %4208 = sst [smem:[#allocation28_spill]] %s4184_s4 }
   0x4   :  { %4209 = sst [smem:[#allocation29_spill]] %s4185_s5 }
   0x5   :  { %4210 = sst [smem:[#allocation30_spill]] %s4186_s6 }
   0x6   :  { %11 = vsyncpa [#allocation4], 0 }
   0x7   :  { %13 = vsyncpa [#allocation4 + $0x1], 0 }
   0x8   :  { %14 = vsyncpa [#allocation7], 0 }
   0x9   :  { %16 = vsyncpa [#allocation7 + $0x1], 0 }
   0xa   :  { %17 = vsyncpa [#allocation10], 0 }
   0xb   :  { %18 = vsyncpa [#allocation5], 0 }
   0xc   :  { %20 = vsyncpa [#allocation5 + $0x1], 0  ;;  %s3395_s21 = smov 0   ;;  %s3397_s22 = smov 0  }
   0xd   :  { %s3399_s23 = smov 0   ;;  %s3401_s24 = smov 0  }
   0xe   :  { %s3403_s25 = smov 0   ;;  %s3405_s26 = smov 0  }
   0xf   :  { %s3407_s27 = smov 0   ;;  %s3409_s28 = smov 0  }
  0x10   :  { %s3411_s29 = smov 0   ;;  %s3413_s30 = smov 0  }
  0x11   :  { %s3415_s7 = smov 0   ;;  %s3417_s8 = smov 0  }
  0x12   :  { %s3419_s9 = smov 0   ;;  %s3421_s10 = smov 0  }
  0x13 LB: > { %4211 = sst [smem:[#allocation18_spill]] %s3295_s21  ;;  %s3464_s11 = sadd.s32 4294967295, %s3347_s10   ;;  %s3347_s10 = sphi %s3421_s10, %s26_s10   ;;  %s3343_s9 = sphi %s3419_s9, %s4273_s9   ;;  %s3339_s8 = sphi %s3417_s8, %s4272_s8   ;;  %s3335_s7 = sphi %s3415_s7, %s4271_s7   ;;  %s3331_s30 = sphi %s3413_s30, %s4270_s30   ;;  %s3327_s29 = sphi %s3411_s29, %s4269_s29   ;;  %s3323_s28 = sphi %s3409_s28, %s4268_s28   ;;  %s3319_s27 = sphi %s3407_s27, %s4262_s27   ;;  %s3315_s26 = sphi %s3405_s26, %s4267_s26   ;;  %s3311_s25 = sphi %s3403_s25, %s4266_s25   ;;  %s3307_s24 = sphi %s3401_s24, %s4265_s24   ;;  %s3303_s23 = sphi %s3399_s23, %s4264_s23   ;;  %s3299_s22 = sphi %s3397_s22, %s4263_s22   ;;  %s3295_s21 = sphi %s3395_s21, %s4260_s21  }
  0x14   : > { %4212 = sst [smem:[#allocation19_spill]] %s3299_s22  ;;  %s2275_s12 = sadd.s32 4294967294, %s3347_s10  }
  0x15   : > { %4213 = sst [smem:[#allocation20_spill]] %s3323_s28  ;;  %p62_p0 = scmp.ne.s32.totalorder %s3323_s28, %s3319_s27 }
  0x16   : > { %4214 = sst [smem:[#allocation21_spill]] %s3331_s30  ;;  %p4192_p1 = scmp.eq.s32.totalorder %s3464_s11, 0 }
  0x17   : > { %4215 = sst [smem:[#allocation22_spill]] %s3335_s7  ;;  %p195_p2 = scmp.ne.s32.totalorder %s3303_s23, %s3299_s22 }
  0x18   : > { %p196_p3 = scmp.eq.s32.totalorder %s3464_s11, 3  ;;  %p3474_p4 = por %p4192_p1, %p62_p0 }
  0x19   : > { %p201_p5 = scmp.ne.s32.totalorder %s3299_s22, %s3295_s21  ;;  %p202_p7 = scmp.eq.s32.totalorder %s2275_s12, 3 }
  0x1a   : > { %s4216_s13 = scalar_select %p3474_p4, 1, 0 }
  0x1b   : > { %p3480_p6 = por %p196_p3, %p195_p2  ;;  %p2278_p8 = scmp.ge.s32.totalorder %s3347_s10, 1 }
  0x1c   : > { %4217 = sst [smem:[#allocation23_spill]] %s4216_s13  ;;  %p209_p9 = scmp.lt.s32.totalorder %s3347_s10, 5 }
  0x1d   : > { %s4218_s14 = scalar_select %p3480_p6, 1, 0 }
  0x1e   : > { %p3486_p10 = por %p202_p7, %p201_p5  ;;  %p3490_p11 = pnand %p2278_p8, %p209_p9 }
  0x1f   : > { %4219 = sst [smem:[#allocation24_spill]] %s4218_s14  ;;  %s3349_s17 = smov [#allocation8]  }
  0x20   : > { %s4220_s15 = scalar_select %p3486_p10, 1, 0 }
  0x21   : > { %s4222_s16 = scalar_select %p3490_p11, 1, 0 }
  0x22   : > { %4221 = sst [smem:[#allocation25_spill]] %s4220_s15  ;;  %s221_s18 = sshll.u32 %s3349_s17, 4  ;;  %s222_s18 = int_to_ptr.vmem [resolvable:$true] %s221_s18 }
  0x23   : > { %p2800_p12 = pneg %p3490_p11  ;;  %s3350_s20 = smov [#allocation9]  }
  0x24   : > { %s234_s27 = sshll.u32 %s3350_s20, 4  ;;  %s4224_s2 = sld [smem:[#allocation26_spill]]  ;;  %s3502_s27 = int_to_ptr.vmem [resolvable:$true] %s234_s27 }
  0x25   : > { %p3498_p13 = pnand %p2800_p12, %p4192_p1 }
  0x27   : > { %p3512_p2 = pneg %p3498_p13 }
  0x2a   : > { %s3045_s21 = scalar_lea.hbm %s4224_s2, 1024 }
  0x2b   : > { %p3046_p0 = scmp.ne.s32.totalorder %s4224_s2, %s3045_s21  ;;  %p3052_p7 = scmp.lt.u32.totalorder %s3045_s21, %s4224_s2 }
  0x2d   : > { %p3048_p3 = pnand %p3512_p2, %p3046_p0 }
  0x2f   : > { %p3049_p5 = pneg %p3048_p3 }
  0x31   : > { %p3054_p8 = pnand %p3052_p7, %p3049_p5 }
  0x33   : > { %3057 = shalt.err (!%p3054_p8)
}
  0x34   : > { %s3058_s15 = scalar_lea.vmem %s222_s18, 1024  ;;  %p3066_p10 = scmp.lt.s32.totalorder %s222_s18, %s222_s18 }
  0x35   : > { %p3059_p9 = scmp.ne.s32.totalorder %s222_s18, %s3058_s15  ;;  %p3067_p6 = scmp.lt.s32.totalorder %s3058_s15, %s3058_s15 }
  0x37   : > { %p3061_p12 = pnand %p3059_p9, %p3512_p2  ;;  %p3068_p4 = por %p3067_p6, %p3066_p10 }
  0x39   : > { %p3062_p1 = pneg %p3061_p12 }
  0x3b   : > { %p3069_p11 = pnand %p3068_p4, %p3062_p1 }
  0x3d   : > { %3072 = shalt.err (!%p3069_p11)
}
  0x3e   : > { %s4201_s6 = smov 64   ;;  %s4202_s14 = smov 4  }
  0x3f   : > { %2803 = dma.hbm_to_vmem [thread:$0]  (!%p3498_p13), %s4224_s2, 1024, %s222_s18, [#allocation7], %s4201_s6, %s4201_s6, %s4202_s14  }
  0x40   : > { %s4226_s3 = sld [smem:[#allocation27_spill]] }
  0x46   : > { %s3073_s5 = scalar_lea.hbm %s4226_s3, 1024 }
  0x47   : > { %p3074_p1 = scmp.ne.s32.totalorder %s4226_s3, %s3073_s5  ;;  %p3080_p10 = scmp.lt.u32.totalorder %s3073_s5, %s4226_s3 }
  0x49   : > { %p3076_p4 = pnand %p3074_p1, %p3512_p2 }
  0x4b   : > { %p3077_p6 = pneg %p3076_p4 }
  0x4d   : > { %p3082_p11 = pnand %p3080_p10, %p3077_p6 }
  0x4f   : > { %3085 = shalt.err (!%p3082_p11)
}
  0x50   : > { %s3086_s18 = scalar_lea.vmem %s3502_s27, 1024  ;;  %p3094_p7 = scmp.lt.s32.totalorder %s3502_s27, %s3502_s27 }
  0x51   : > { %p3087_p0 = scmp.ne.s32.totalorder %s3502_s27, %s3086_s18  ;;  %p3095_p8 = scmp.lt.s32.totalorder %s3086_s18, %s3086_s18 }
  0x53   : > { %p3089_p3 = pnand %p3087_p0, %p3512_p2  ;;  %p3096_p9 = por %p3095_p8, %p3094_p7 }
  0x55   : > { %p3090_p5 = pneg %p3089_p3 }
  0x57   : > { %p3097_p12 = pnand %p3096_p9, %p3090_p5 }
  0x59   : > { %3100 = shalt.err (!%p3097_p12)
}
  0x5a   : > { %2806 = dma.hbm_to_vmem [thread:$0]  (!%p3498_p13), %s4226_s3, 1024, %s3502_s27, [#allocation10], %s4201_s6, %s4201_s6, %s4202_s14  }
  0x5b   : > { %s3353_s30 = smov [#allocation11]   ;;  %s4227_s4 = sld [smem:[#allocation28_spill]] }
  0x5c   : > { %s247_s13 = sshll.u32 %s3353_s30, 4  ;;  %s248_s13 = int_to_ptr.vmem [resolvable:$true] %s247_s13 }
  0x61   : > { %s3101_s12 = scalar_lea.hbm %s4227_s4, 1024 }
  0x62   : > { %p3102_p1 = scmp.ne.s32.totalorder %s4227_s4, %s3101_s12  ;;  %p3108_p10 = scmp.lt.u32.totalorder %s3101_s12, %s4227_s4 }
  0x64   : > { %p3104_p4 = pnand %p3102_p1, %p3512_p2 }
  0x66   : > { %p3105_p6 = pneg %p3104_p4 }
  0x68   : > { %p3110_p11 = pnand %p3108_p10, %p3105_p6 }
  0x6a   : > { %3113 = shalt.err (!%p3110_p11)
}
  0x6b   : > { %s3114_s27 = scalar_lea.vmem %s248_s13, 1024  ;;  %p3122_p7 = scmp.lt.s32.totalorder %s248_s13, %s248_s13 }
  0x6c   : > { %p3115_p0 = scmp.ne.s32.totalorder %s248_s13, %s3114_s27  ;;  %p3123_p8 = scmp.lt.s32.totalorder %s3114_s27, %s3114_s27 }
  0x6e   : > { %p3117_p3 = pnand %p3115_p0, %p3512_p2  ;;  %p3124_p9 = por %p3123_p8, %p3122_p7 }
  0x70   : > { %p3118_p5 = pneg %p3117_p3 }
  0x72   : > { %p3125_p12 = pnand %p3124_p9, %p3118_p5 }
  0x74   : > { %3128 = shalt.err (!%p3125_p12)
}
  0x75   : > { %2809 = dma.hbm_to_vmem [thread:$0]  (!%p3498_p13), %s4227_s4, 1024, %s248_s13, [#allocation10], %s4201_s6, %s4201_s6, %s4202_s14  }
  0x76   : > { %s35_s19 = sadd.s32 1, %s3339_s8  ;;  %s38_s17 = sadd.s32 1, %s3343_s9 }
  0x77   : > { %p36_p2 = scmp.ge.s32.totalorder %s35_s19, 2  ;;  %s2276_s22 = sshll.u32 %s3343_s9, 1 }
  0x78   : > { %s43_s30 = sadd.s32 %s3339_s8, %s2276_s22  ;;  %s49_s21 = sadd.s32 1, %s3327_s29 }
  0x79   : > { %s4275_s19 = smov (%p36_p2, %s35_s19), 0  ;;  %s4277_s17 = smov (!%p36_p2, %s38_s17), %s3343_s9 }
  0x7a   : > { %p56_p1 = scmp.ne.s32.totalorder %s3327_s29, %s3323_s28  ;;  %p4205_p4 = scmp.eq.s32.totalorder %s3347_s10, 0 }
  0x7b   : > { %p40_p13 = scmp.ge.s32.totalorder %s4277_s17, 2  ;;  %s72_s13 = ssub.s32 %s3339_s8, %s4275_s19 }
  0x7c   : > { %p3593_p6 = por %p4205_p4, %p56_p1  ;;  %p3597_p10 = scmp.eq.s32.totalorder %s72_s13, 0 }
  0x7d   : > { %s4279_s17 = smov (%p40_p13, %s4277_s17), 0  ;;  %s185_s20 = sadd.s32 1, %s3303_s23 }
  0x7e   : > { %p4204_p11 = scmp.lt.s32.totalorder %s3347_s10, 4  ;;  %s2277_s15 = sshll.u32 %s4279_s17, 1 }
  0x7f   : > { %s182_s18 = ssub.s32 %s3343_s9, %s4279_s17  ;;  %s45_s27 = sadd.s32 %s2277_s15, %s4275_s19 }
  0x80   : > { %p183_p0 = scmp.eq.s32.totalorder %s182_s18, 0  ;;  %s46_s2 = ssub.s32 %s43_s30, %s45_s27 }
  0x81   : > { %s264_s5 = sand.u32 1, %s3327_s29   ;;  %p47_p3 = scmp.eq.s32.totalorder %s46_s2, 0 }
  0x82   : > { %s3611_s22 = scalar_select %p183_p0, %s3303_s23, %s185_s20  }
  0x83   : > { %s3614_s13 = scalar_select %p47_p3, %s3327_s29, %s49_s21  }
  0x84   : > { %s2283_s6 = sshll.u32 %s264_s5, 9  ;;  %s2402_s14 = sshll.u32 %s43_s30, 13 }
  0x85   : > { %s3619_s28 = scalar_lea.hbm %s4180_s0, %s2402_s14  ;;  %s268_s15 = scalar_lea.vmem [#allocation3], %s2283_s6 }
  0x86   : > { %s277_s18 = sshll.u32 %s268_s15, 4  ;;  %p3625_p5 = pnand %p4204_p11, %p3593_p6  ;;  %s3629_s18 = int_to_ptr.vmem [resolvable:$true] %s277_s18 }
  0x87   : > { %s3631_s30 = scalar_lea.sflag [#allocation4], %s264_s5  ;;  %s3129_s3 = scalar_lea.hbm %s3619_s28, 8192 }
  0x88   : > { %p3130_p7 = scmp.ne.s32.totalorder %s3619_s28, %s3129_s3  ;;  %p3131_p8 = pneg %p3625_p5 }
  0x89   : > { %s3134_s14 = scalar_lea.hbm %s4180_s0, 32768  ;;  %p3135_p2 = scmp.lt.u32.totalorder %s3619_s28, %s4180_s0 }
  0x8a   : > { %p3132_p9 = pnand %p3131_p8, %p3130_p7  ;;  %p3136_p1 = scmp.lt.u32.totalorder %s3134_s14, %s3129_s3 }
  0x8b   : > { %p3138_p6 = scmp.lt.u32.totalorder %s3129_s3, %s3619_s28 }
  0x8c   : > { %p3133_p12 = pneg %p3132_p9  ;;  %p3137_p13 = por %p3136_p1, %p3135_p2 }
  0x8e   : > { %p3139_p0 = por %p3138_p6, %p3137_p13 }
  0x90   : > { %p3140_p3 = pnand %p3139_p0, %p3133_p12 }
  0x92   : > { %3143 = shalt.err (!%p3140_p3)
}
  0x93   : > { %s3144_s27 = scalar_lea.vmem %s3629_s18, 8192  ;;  %s3354_s2 = smov [#allocation3]  }
  0x94   : > { %p3145_p7 = scmp.ne.s32.totalorder %s3629_s18, %s3144_s27  ;;  %s3149_s5 = sshll.u32 %s3354_s2, 4  ;;  %s3150_s5 = int_to_ptr.vmem [resolvable:$false] %s3149_s5 }
  0x95   : > { %s3151_s15 = scalar_lea.vmem %s3150_s5, 16384  ;;  %p3152_p4 = scmp.lt.s32.totalorder %s3629_s18, %s3150_s5 }
  0x96   : > { %p3147_p9 = pnand %p3145_p7, %p3131_p8  ;;  %p3153_p2 = scmp.lt.s32.totalorder %s3151_s15, %s3144_s27 }
  0x98   : > { %p3148_p11 = pneg %p3147_p9  ;;  %p3154_p1 = por %p3153_p2, %p3152_p4 }
  0x9a   : > { %p3155_p13 = pnand %p3154_p1, %p3148_p11 }
  0x9c   : > { %3158 = shalt.err (!%p3155_p13)
}
  0x9d   : > { %s4231_s3 = smov 4   ;;  %s4232_s4 = smov 64  }
  0x9e   : > { %2813 = dma.hbm_to_vmem [thread:$0]  (!%p3625_p5), %s3619_s28, 8192, %s3629_s18, %s3631_s30, %s4232_s4, %s4232_s4, %s4231_s3  }
  0x9f   : > { %s75_s20 = sadd.s32 1, %s3315_s26  ;;  %p82_p4 = scmp.ne.s32.totalorder %s3315_s26, %s3311_s25 }
  0xa0   : > { %s3668_s6 = scalar_select %p3597_p10, %s3315_s26, %s75_s20  }
  0xa1   : > { %p4233_p11 = scmp.eq.s32.totalorder %s3347_s10, 0  ;;  %p88_p12 = scmp.ne.s32.totalorder %s3311_s25, %s3307_s24 }
  0xa2   : > { %s287_s14 = sand.u32 1, %s3347_s10   ;;  %s289_s21 = sand.u32 1, %s3315_s26  }
  0xa3   : > { %p84_p8 = por %p82_p4, %p4233_p11  ;;  %p4234_p6 = scmp.eq.s32.totalorder %s3464_s11, 0 }
  0xa4   : > { %s2287_s27 = sshll.u32 %s289_s21, 5  ;;  %s2403_s2 = sshll.u32 %s3339_s8, 9 }
  0xa5   : > { %p3678_p0 = por %p88_p12, %p4234_p6  ;;  %s3686_s28 = scalar_lea.hbm %s4181_s1, %s2403_s2 }
  0xa6   : > { %s291_s12 = scalar_lea.vmem [#allocation6], %s2287_s27  ;;  %p4236_p10 = scmp.lt.s32.totalorder %s3347_s10, 4 }
  0xa7   : > { %s299_s24 = sshll.u32 %s291_s12, 4  ;;  %s288_s30 = scalar_lea.sflag [#allocation7], %s287_s14  ;;  %s3694_s24 = int_to_ptr.vmem [resolvable:$true] %s299_s24 }
  0xa8   : > { %p3690_p5 = pnand %p4236_p10, %p84_p8  ;;  %s3159_s3 = scalar_lea.hbm %s3686_s28, 512 }
  0xa9   : > { %p3160_p3 = scmp.ne.s32.totalorder %s3686_s28, %s3159_s3  ;;  %s3164_s21 = scalar_lea.hbm %s4181_s1, 1024 }
  0xaa   : > { %p3161_p7 = pneg %p3690_p5  ;;  %p3165_p1 = scmp.lt.u32.totalorder %s3686_s28, %s4181_s1 }
  0xab   : > { %p3166_p13 = scmp.lt.u32.totalorder %s3164_s21, %s3159_s3  ;;  %p3168_p11 = scmp.lt.u32.totalorder %s3159_s3, %s3686_s28 }
  0xac   : > { %p3162_p9 = pnand %p3161_p7, %p3160_p3 }
  0xad   : > { %p3167_p4 = por %p3166_p13, %p3165_p1 }
  0xae   : > { %p3163_p2 = pneg %p3162_p9 }
  0xaf   : > { %p3169_p8 = por %p3168_p11, %p3167_p4 }
  0xb1   : > { %p3170_p12 = pnand %p3169_p8, %p3163_p2 }
  0xb3   : > { %3173 = shalt.err (!%p3170_p12)
}
  0xb4   : > { %s3174_s14 = scalar_lea.vmem %s3694_s24, 512  ;;  %s3355_s5 = smov [#allocation6]  }
  0xb5   : > { %p3175_p6 = scmp.ne.s32.totalorder %s3694_s24, %s3174_s14  ;;  %s3179_s15 = sshll.u32 %s3355_s5, 4  ;;  %s3180_s15 = int_to_ptr.vmem [resolvable:$false] %s3179_s15 }
  0xb6   : > { %s3181_s12 = scalar_lea.vmem %s3180_s15, 1024  ;;  %p3182_p9 = scmp.lt.s32.totalorder %s3694_s24, %s3180_s15 }
  0xb7   : > { %p3177_p10 = pnand %p3175_p6, %p3161_p7  ;;  %p3183_p1 = scmp.lt.s32.totalorder %s3181_s12, %s3174_s14 }
  0xb9   : > { %p3178_p3 = pneg %p3177_p10  ;;  %p3184_p13 = por %p3183_p1, %p3182_p9 }
  0xbb   : > { %p3185_p4 = pnand %p3184_p13, %p3178_p3 }
  0xbd   : > { %3188 = shalt.err (!%p3185_p4)
}
  0xbe   : > { %2816 = dma.hbm_to_vmem [thread:$0]  (!%p3690_p5), %s3686_s28, 512, %s3694_s24, %s288_s30  }
  0xbf   : > { %p4238_p2 = scmp.ne.s32.totalorder %s4222_s16, 0 }
  0xc0   : > { %s4239_s3 = sld [smem:[#allocation20_spill]] (!%p4238_p2)  ;;  %s4240_s4 = sld [smem:[#allocation23_spill]] (!%p4238_p2) }
  0xc1   : > { %308 = sbr.rel (%p4238_p2) target bundleno = 1396 (0x574), region = 44 }
  0xc6   : > { %s310_s20 = sand.u32 (!%p4238_p2), 1, %s4239_s3   ;;  %p4241_p7 = scmp.ne.s32.totalorder (!%p4238_p2), %s4240_s4, 0 }
  0xc7   : > { %s2291_s21 = sshll.u32 (!%p4238_p2), %s310_s20, 9  ;;  %s311_s27 = scalar_lea.sflag (!%p4238_p2), [#allocation4], %s310_s20 }
  0xc8   : > { %s3724_s2 = scalar_lea.vmem [#allocation3], %s2291_s21 }
  0xc9   : > { %3274 = dma.done.wait (%p4241_p7), %s311_s27, 8192  }
  0xca   : > { %3276 = vsyncadd (%p4241_p7), %s311_s27, 4294959104  ;;  %s319_s18 = sand.u32 1, %s3464_s11   ;;  %s321_s28 = sand.u32 1, %s3311_s25  }
  0xcb   : > { %s2292_s24 = sshll.u32 %s321_s28, 5  ;;  %s320_s16 = scalar_lea.sflag [#allocation7], %s319_s18 }
  0xcc   : > { %s3732_s30 = scalar_lea.vmem [#allocation6], %s2292_s24 }
  0xcd   : > { %3278 = dma.done.wait (%p3678_p0), %s320_s16, 512  }
  0xce   : > { %3280 = vsyncadd (%p3678_p0), %s320_s16, 4294966784  ;;  %p4242_p5 = scmp.eq.s32.totalorder %s3464_s11, 0 }
  0xd0   : > { %3282 = dma.done.wait (%p4242_p5), [#allocation7], 1024   ;;  %p4243_p11 = pmov %p4242_p5 }
  0xd1   : > { %p4244_p8 = pmov %p4242_p5 }
  0xd2   : > { %3284 = vsyncadd (%p4243_p11), [#allocation7], 4294966272 }
  0xd3   : > { %3286 = dma.done.wait (%p4244_p8), [#allocation10], 2048   ;;  %p4245_p12 = pmov %p4242_p5 }
  0xd4   : > { %s4246_s14 = sld [smem:[#allocation19_spill]]  ;;  %s4247_s12 = sld [smem:[#allocation21_spill]] }
  0xd5   : > { %3288 = vsyncadd (%p4245_p12), [#allocation10], 4294965248 }
  0xda   : > { %s366_s5 = sand.u32 1, %s4246_s14   ;;  %p2297_p0 = scmp.ne.s32.totalorder %s4247_s12, 0 }
  0xdb   : > { %s3749_s15 = sshll.u32 %s366_s5, 3  ;;  %v3356_v0 = vmov (!%p2297_p0), 0.0  }
  0xdc   : > { %s368_s7 = scalar_lea.vmem [#allocation12], %s3749_s15  ;;  %377 = sbr.rel (%p2297_p0) target bundleno = 227 (0xe3), region = 68  ;;  %378 = vst [vmem:[#allocation2] sm:$0xff] (!%p2297_p0), %v3356_v0 }
  0xe3 PF: > { %v2949_v1 = vld [vmem:[#allocation8] sm:$0xff]   ;;  %v2950_v2 = vld [vmem:[#allocation8 + $0x8] sm:$0xff]   ;;  %v2951_v3 = vld [vmem:[#allocation8 + $0x10] sm:$0xff]   ;;  %s4248_s4 = sld [smem:[#allocation29_spill]]  ;;  %s4249_s20 = sld [smem:[#allocation21_spill]] }
  0xe4   : > { %2582 = vmatprep.subr.bf16.mxu0 %v2949_v1  ;;  %2766 = vmatprep.subr.bf16.mxu1 %v2949_v1  ;;  %v2952_v4 = vld [vmem:[#allocation8 + $0x18] sm:$0xff]   ;;  %v2957_v5 = vld [vmem:[%s3724_s2] sm:$0xff]   ;;  %v2954_v7 = vld [vmem:[#allocation8 + $0x28] sm:$0xff]  }
  0xe5   : > { %2583 = vmatpush3.bf16.msra.mxu0 %v2949_v1  ;;  %2774 = vmatpush3.bf16.msra.mxu1 %v2949_v1  ;;  %v2953_v6 = vld [vmem:[#allocation8 + $0x20] sm:$0xff]   ;;  %v2955_v8 = vld [vmem:[#allocation8 + $0x30] sm:$0xff]   ;;  %v2956_v9 = vld [vmem:[#allocation8 + $0x38] sm:$0xff]  }
  0xe6   : > { %2584 = vmatprep.subr.bf16.mxu0 %v2950_v2  ;;  %2767 = vmatprep.subr.bf16.mxu1 %v2950_v2  ;;  %v2958_v10 = vld [vmem:[%s3724_s2 + $0x8] sm:$0xff]   ;;  %v2959_v11 = vld [vmem:[%s3724_s2 + $0x10] sm:$0xff]   ;;  %v2960_v12 = vld [vmem:[%s3724_s2 + $0x18] sm:$0xff]  }
  0xe7   : > { %2598 = vmatprep.mubr.bf16.mxu0 %v2957_v5  ;;  %v2961_v13 = vld [vmem:[%s3724_s2 + $0x20] sm:$0xff]   ;;  %v2962_v14 = vld [vmem:[%s3724_s2 + $0x28] sm:$0xff]   ;;  %v2963_v15 = vld [vmem:[%s3724_s2 + $0x30] sm:$0xff]  }
  0xe8   : > { %v2995_v16 = vld [vmem:[%s3724_s2 + $0x170] sm:$0xff]   ;;  %v2996_v17 = vld [vmem:[%s3724_s2 + $0x178] sm:$0xff]   ;;  %v2965_v19 = vld [vmem:[%s3724_s2 + $0x40] sm:$0xff]  }
  0xe9   : > { %2585 = vmatpush3.bf16.msra.mxu0 %v2950_v2  ;;  %2775 = vmatpush3.bf16.msra.mxu1 %v2950_v2  ;;  %v2964_v18 = vld [vmem:[%s3724_s2 + $0x38] sm:$0xff]   ;;  %v2999_v20 = vld [vmem:[%s3724_s2 + $0x180] sm:$0xff]   ;;  %v3000_v21 = vld [vmem:[%s3724_s2 + $0x188] sm:$0xff]   ;;  %p2379_p6 = scmp.ne.s32.totalorder %s4249_s20, 1 }
  0xea   : > { %2586 = vmatprep.subr.bf16.mxu0 %v2951_v3  ;;  %2768 = vmatprep.subr.bf16.mxu1 %v2951_v3  ;;  %v2966_v22 = vld [vmem:[%s3724_s2 + $0x48] sm:$0xff]   ;;  %v2967_v23 = vld [vmem:[%s3724_s2 + $0x50] sm:$0xff]   ;;  %v3004_v25 = vld [vmem:[%s3724_s2 + $0x198] sm:$0xff]   ;;  %vm3358_vm0 = vmmov (!%p2379_p6), 0  }
  0xeb   : > { %2690 = vmatprep.mubr.bf16.mxu1 %v2995_v16  ;;  %v3003_v24 = vld [vmem:[%s3724_s2 + $0x190] sm:$0xff]   ;;  %v2968_v26 = vld [vmem:[%s3724_s2 + $0x58] sm:$0xff]   ;;  %v2969_v27 = vld [vmem:[%s3724_s2 + $0x60] sm:$0xff]  }
  0xec   : > { %v3007_v28 = vld [vmem:[%s3724_s2 + $0x1a0] sm:$0xff]   ;;  %v3008_v29 = vld [vmem:[%s3724_s2 + $0x1a8] sm:$0xff]   ;;  %v2971_v31 = vld [vmem:[%s3724_s2 + $0x70] sm:$0xff]  }
  0xed   : > { %2587 = vmatpush3.bf16.msra.mxu0 %v2951_v3  ;;  %2776 = vmatpush3.bf16.msra.mxu1 %v2951_v3  ;;  %v2970_v30 = vld [vmem:[%s3724_s2 + $0x68] sm:$0xff]   ;;  %v3011_v32 = vld [vmem:[%s3724_s2 + $0x1b0] sm:$0xff]   ;;  %v3012_v33 = vld [vmem:[%s3724_s2 + $0x1b8] sm:$0xff]  }
  0xee   : > { %2588 = vmatprep.subr.bf16.mxu0 %v2952_v4  ;;  %2769 = vmatprep.subr.bf16.mxu1 %v2952_v4  ;;  %v3013_v34 = vld [vmem:[%s3724_s2 + $0x1c0] sm:$0xff]   ;;  %v2972_v35 = vld [vmem:[%s3724_s2 + $0x78] sm:$0xff]   ;;  %v3014_v37 = vld [vmem:[%s3724_s2 + $0x1c8] sm:$0xff]  }
  0xef   : > { %v2973_v36 = vld [vmem:[%s3724_s2 + $0x80] sm:$0xff]   ;;  %v3015_v38 = vld [vmem:[%s3724_s2 + $0x1d0] sm:$0xff]   ;;  %v2974_v39 = vld [vmem:[%s3724_s2 + $0x88] sm:$0xff]  }
  0xf0   : > { %v2975_v40 = vld [vmem:[%s3724_s2 + $0x90] sm:$0xff]   ;;  %v3016_v41 = vld [vmem:[%s3724_s2 + $0x1d8] sm:$0xff]   ;;  %v3017_v42 = vld [vmem:[%s3724_s2 + $0x1e0] sm:$0xff]  }
  0xf1   : > { %2589 = vmatpush3.bf16.msra.mxu0 %v2952_v4  ;;  %2777 = vmatpush3.bf16.msra.mxu1 %v2952_v4  ;;  %v2976_v43 = vld [vmem:[%s3724_s2 + $0x98] sm:$0xff]   ;;  %v2977_v44 = vld [vmem:[%s3724_s2 + $0xa0] sm:$0xff]   ;;  %v3018_v45 = vld [vmem:[%s3724_s2 + $0x1e8] sm:$0xff]  }
  0xf2   : > { %2590 = vmatprep.subr.bf16.mxu0 %v2953_v6  ;;  %2770 = vmatprep.subr.bf16.mxu1 %v2953_v6  ;;  %v2978_v46 = vld [vmem:[%s3724_s2 + $0xa8] sm:$0xff]   ;;  %v2979_v47 = vld [vmem:[%s3724_s2 + $0xb0] sm:$0xff]   ;;  %v3020_v49 = vld [vmem:[%s3724_s2 + $0x1f8] sm:$0xff]  }
  0xf3   : > { %v3019_v48 = vld [vmem:[%s3724_s2 + $0x1f0] sm:$0xff]   ;;  %v2980_v50 = vld [vmem:[%s3724_s2 + $0xb8] sm:$0xff]   ;;  %v2981_v51 = vld [vmem:[%s3724_s2 + $0xc0] sm:$0xff]  }
  0xf4   : > { %v2982_v52 = vld [vmem:[%s3724_s2 + $0xc8] sm:$0xff]   ;;  %v2983_v53 = vld [vmem:[%s3724_s2 + $0xd0] sm:$0xff]   ;;  %v2984_v54 = vld [vmem:[%s3724_s2 + $0xd8] sm:$0xff]  }
  0xf5   : > { %2591 = vmatpush3.bf16.msra.mxu0 %v2953_v6  ;;  %2778 = vmatpush3.bf16.msra.mxu1 %v2953_v6  ;;  %v2985_v55 = vld [vmem:[%s3724_s2 + $0xe0] sm:$0xff]   ;;  %v2986_v56 = vld [vmem:[%s3724_s2 + $0xe8] sm:$0xff]   ;;  %v2987_v57 = vld [vmem:[%s3724_s2 + $0xf0] sm:$0xff]  }
  0xf6   : > { %2592 = vmatprep.subr.bf16.mxu0 %v2954_v7  ;;  %2771 = vmatprep.subr.bf16.mxu1 %v2954_v7  ;;  %v2988_v58 = vld [vmem:[%s3724_s2 + $0xf8] sm:$0xff]   ;;  %v2989_v59 = vld [vmem:[%s3724_s2 + $0x100] sm:$0xff]   ;;  %v2990_v60 = vld [vmem:[%s3724_s2 + $0x108] sm:$0xff]  }
  0xf7   : > { %v2991_v61 = vld [vmem:[%s3724_s2 + $0x110] sm:$0xff]   ;;  %v2992_v62 = vld [vmem:[%s3724_s2 + $0x118] sm:$0xff]   ;;  %v2993_v63 = vld [vmem:[%s3724_s2 + $0x120] sm:$0xff]  }
  0xf8   : > { %v2994_v0 = vld [vmem:[%s3724_s2 + $0x128] sm:$0xff]   ;;  %v2997_v1 = vld [vmem:[%s3724_s2 + $0x130] sm:$0xff]   ;;  %v2998_v2 = vld [vmem:[%s3724_s2 + $0x138] sm:$0xff]  }
  0xf9   : > { %2593 = vmatpush3.bf16.msra.mxu0 %v2954_v7  ;;  %2779 = vmatpush3.bf16.msra.mxu1 %v2954_v7  ;;  %v3001_v3 = vld [vmem:[%s3724_s2 + $0x140] sm:$0xff]   ;;  %v3002_v4 = vld [vmem:[%s3724_s2 + $0x148] sm:$0xff]   ;;  %v3005_v5 = vld [vmem:[%s3724_s2 + $0x150] sm:$0xff]  }
  0xfa   : > { %2594 = vmatprep.subr.bf16.mxu0 %v2955_v8  ;;  %2772 = vmatprep.subr.bf16.mxu1 %v2955_v8  ;;  %v3006_v6 = vld [vmem:[%s3724_s2 + $0x158] sm:$0xff]   ;;  %v3009_v7 = vld [vmem:[%s3724_s2 + $0x160] sm:$0xff]  }
  0xfd   : > { %2595 = vmatpush3.bf16.msra.mxu0 %v2955_v8  ;;  %2780 = vmatpush3.bf16.msra.mxu1 %v2955_v8  ;;  %v3010_v8 = vld [vmem:[%s3724_s2 + $0x168] sm:$0xff]   ;;  %s4250_s2 = sld [smem:[#allocation29_spill]] (!%p2379_p6) }
  0xfe   : > { %2596 = vmatprep.subr.bf16.mxu0 %v2956_v9  ;;  %2773 = vmatprep.subr.bf16.mxu1 %v2956_v9 }
 0x101   : > { %2597 = vmatpush3.bf16.msra.mxu0 %v2956_v9  ;;  %2781 = vmatpush3.bf16.msra.mxu1 %v2956_v9  ;;  %v3818_v9 = vld [vmem:[%s3732_s30] sm:$0xff] }
 0x104   : > { %2599 = vmatmul.mubr.bf16.vlgmr.msra.gmra.mrb[0].mxu0 %v2958_v10  ;;  %2691 = vmatmul.mubr.bf16.vlgmr.msra.gmra.mrb[0].mxu1 %v2996_v17  ;;  %v2372_v10 = vcombine.high %v3818_v9, %v3818_v9 }
 0x105   : > { %2602 = vmatprep.mubr.bf16.mxu0 %v2959_v11  ;;  %2694 = vmatprep.mubr.bf16.mxu1 %v2999_v20  ;;  %v3825_v11 = vld [vmem:[%s4248_s4] ss:$0 sm:$0xff] }
 0x10c   : > { %2603 = vmatmul.mubr.bf16.gmra.mrb[4].mxu0 %v2960_v12  ;;  %2695 = vmatmul.mubr.bf16.gmra.mrb[4].mxu1 %v3000_v21 }
 0x10d   : > { %2606 = vmatprep.mubr.bf16.mxu0 %v2961_v13  ;;  %2698 = vmatprep.mubr.bf16.mxu1 %v3003_v24 }
 0x114   : > { %2607 = vmatmul.mubr.bf16.gmra.mrb[8].mxu0 %v2962_v14  ;;  %2699 = vmatmul.mubr.bf16.gmra.mrb[8].mxu1 %v3004_v25 }
 0x115   : > { %2610 = vmatprep.mubr.bf16.mxu0 %v2963_v15  ;;  %2702 = vmatprep.mubr.bf16.mxu1 %v3007_v28 }
 0x11c   : > { %2611 = vmatmul.mubr.bf16.gmra.mrb[12].mxu0 %v2964_v18  ;;  %2703 = vmatmul.mubr.bf16.gmra.mrb[12].mxu1 %v3008_v29 }
 0x11d   : > { %2614 = vmatprep.mubr.bf16.mxu0 %v2965_v19  ;;  %2706 = vmatprep.mubr.bf16.mxu1 %v3011_v32 }
 0x124   : > { %2615 = vmatmul.mubr.bf16.gmra.mrb[16].mxu0 %v2966_v22  ;;  %2707 = vmatmul.mubr.bf16.gmra.mrb[16].mxu1 %v3012_v33 }
 0x125   : > { %2618 = vmatprep.mubr.bf16.mxu0 %v2967_v23  ;;  %2710 = vmatprep.mubr.bf16.mxu1 %v3013_v34 }
 0x12c   : > { %2619 = vmatmul.mubr.bf16.gmra.mrb[20].mxu0 %v2968_v26  ;;  %2711 = vmatmul.mubr.bf16.gmra.mrb[20].mxu1 %v3014_v37 }
 0x12d   : > { %2622 = vmatprep.mubr.bf16.mxu0 %v2969_v27  ;;  %2714 = vmatprep.mubr.bf16.mxu1 %v3015_v38 }
 0x134   : > { %2623 = vmatmul.mubr.bf16.gmra.mrb[24].mxu0 %v2970_v30  ;;  %2715 = vmatmul.mubr.bf16.gmra.mrb[24].mxu1 %v3016_v41 }
 0x135   : > { %2626 = vmatprep.mubr.bf16.mxu0 %v2971_v31  ;;  %2718 = vmatprep.mubr.bf16.mxu1 %v3017_v42 }
 0x13c   : > { %2627 = vmatmul.mubr.bf16.gmra.mrb[28].mxu0 %v2972_v35  ;;  %2719 = vmatmul.mubr.bf16.gmra.mrb[28].mxu1 %v3018_v45 }
 0x13d   : > { %2630 = vmatprep.mubr.bf16.mxu0 %v2973_v36  ;;  %2722 = vmatprep.mubr.bf16.mxu1 %v3019_v48 }
 0x144   : > { %2631 = vmatmul.mubr.bf16.gmra.mrb[32].mxu0 %v2974_v39  ;;  %2723 = vmatmul.mubr.bf16.gmra.mrb[32].mxu1 %v3020_v49 }
 0x145   : > { %2634 = vmatprep.mubr.bf16.mxu0 %v2975_v40  ;;  %1764 = vmatprep.mubr.bf16.mxu1 %v2372_v10 }
 0x14c   : > { %2635 = vmatmul.mubr.bf16.gmra.mrb[36].mxu0 %v2976_v43 }
 0x14d   : > { %2638 = vmatprep.mubr.bf16.mxu0 %v2977_v44 }
 0x154   : > { %2639 = vmatmul.mubr.bf16.gmra.mrb[40].mxu0 %v2978_v46 }
 0x155   : > { %2642 = vmatprep.mubr.bf16.mxu0 %v2979_v47 }
 0x15c   : > { %2643 = vmatmul.mubr.bf16.gmra.mrb[44].mxu0 %v2980_v50 }
 0x15d   : > { %2646 = vmatprep.mubr.bf16.mxu0 %v2981_v51 }
 0x164   : > { %2647 = vmatmul.mubr.bf16.gmra.mrb[48].mxu0 %v2982_v52 }
 0x165   : > { %2650 = vmatprep.mubr.bf16.mxu0 %v2983_v53 }
 0x16c   : > { %2651 = vmatmul.mubr.bf16.gmra.mrb[52].mxu0 %v2984_v54 }
 0x16d   : > { %2654 = vmatprep.mubr.bf16.mxu0 %v2985_v55 }
 0x174   : > { %2655 = vmatmul.mubr.bf16.gmra.mrb[56].mxu0 %v2986_v56 }
 0x175   : > { %2658 = vmatprep.mubr.bf16.mxu0 %v2987_v57 }
 0x17c   : > { %2659 = vmatmul.mubr.bf16.gmra.mrb[60].mxu0 %v2988_v58 }
 0x17d   : > { %2662 = vmatprep.mubr.bf16.mxu0 %v2989_v59 }
 0x184   : > { %2663 = vmatmul.mubr.bf16.gmra.mrb[64].mxu0 %v2990_v60 }
 0x185   : > { %2666 = vmatprep.mubr.bf16.mxu0 %v2991_v61 }
 0x18c   : > { %2667 = vmatmul.mubr.bf16.gmra.mrb[68].mxu0 %v2992_v62 }
 0x18d   : > { %2670 = vmatprep.mubr.bf16.mxu0 %v2993_v63 }
 0x194   : > { %2671 = vmatmul.mubr.bf16.gmra.mrb[72].mxu0 %v2994_v0 }
 0x195   : > { %2674 = vmatprep.mubr.bf16.mxu0 %v2997_v1 }
 0x19c   : > { %2675 = vmatmul.mubr.bf16.gmra.mrb[76].mxu0 %v2998_v2 }
 0x19d   : > { %2678 = vmatprep.mubr.bf16.mxu0 %v3001_v3 }
 0x1a4   : > { %2679 = vmatmul.mubr.bf16.gmra.mrb[80].mxu0 %v3002_v4 }
 0x1a5   : > { %2682 = vmatprep.mubr.bf16.mxu0 %v3005_v5 }
 0x1ac   : > { %2683 = vmatmul.mubr.bf16.gmra.mrb[84].mxu0 %v3006_v6 }
 0x1ad   : > { %2686 = vmatprep.mubr.bf16.mxu0 %v3009_v7 }
 0x1b4   : > { %2687 = vmatmul.mubr.bf16.gmra.mrb[88].mxu0 %v3010_v8 }
 0x1d7   : > { %v2600_v12 = vpop.f32.mrb[0].mxu0  ;;  %v2692_v50 = vpop.f32.mrb[0].mxu1 }
 0x1d8   : > { %v1005_v13 = vadd.f32 %v2600_v12, %v3825_v11  ;;  %v996_v14 = vpop.f32.mrb[1].mxu0  ;;  %v1364_v53 = vpop.f32.mrb[1].mxu1  ;;  %v1373_v58 = vadd.f32 %v2692_v50, %v3825_v11 }
 0x1d9   : > { %v997_v15 = vadd.f32 %v3825_v11, %v996_v14  ;;  %v2601_v16 = vpop.f32.mrb[2].mxu0  ;;  %v2693_v55 = vpop.f32.mrb[2].mxu1  ;;  %v1365_v59 = vadd.f32 %v3825_v11, %v1364_v53 }
 0x1da   : > { %v1008_v17 = vadd.f32 %v2601_v16, %v3825_v11  ;;  %v999_v18 = vpop.f32.mrb[3].mxu0  ;;  %v1509_v20 = vmax.f32 %v1005_v13, 0.0  ;;  %v1376_v60 = vadd.f32 %v2693_v55, %v3825_v11  ;;  %v1367_v61 = vpop.f32.mrb[3].mxu1  ;;  %v1601_v3 = vmax.f32 %v1373_v58, 0.0 }
 0x1db   : > { %v1000_v19 = vadd.f32 %v3825_v11, %v999_v18  ;;  %v1507_v22 = vmax.f32 %v997_v15, 0.0  ;;  %v1368_v0 = vadd.f32 %v3825_v11, %v1367_v61  ;;  %v1599_v4 = vmax.f32 %v1365_v59, 0.0 }
 0x1dc   : > { %v1510_v21 = vmax.f32 %v1008_v17, 0.0  ;;  %v1602_v5 = vmax.f32 %v1376_v60, 0.0 }
 0x1dd   : > { %v1508_v23 = vmax.f32 %v1000_v19, 0.0  ;;  %v1600_v8 = vmax.f32 %v1368_v0, 0.0 }
 0x1de   : > { %v3831_v24 = vpack.c.bf16 %v1510_v21, %v1509_v20  ;;  %v3859_v12 = vpack.c.bf16 %v1602_v5, %v1601_v3 }
 0x1df   : > { %v3833_v25 = vpack.c.bf16 %v1508_v23, %v1507_v22  ;;  %v2604_v26 = vpop.f32.mrb[4].mxu0  ;;  %v3861_v15 = vpack.c.bf16 %v1600_v8, %v1599_v4  ;;  %v2696_v16 = vpop.f32.mrb[4].mxu1 }
 0x1e0   : > { %v1021_v27 = vadd.f32 %v2604_v26, %v3825_v11  ;;  %v1012_v28 = vpop.f32.mrb[5].mxu0  ;;  %v1380_v19 = vpop.f32.mrb[5].mxu1  ;;  %v1389_v26 = vadd.f32 %v2696_v16, %v3825_v11 }
 0x1e1   : > { %v1013_v29 = vadd.f32 %v3825_v11, %v1012_v28  ;;  %v2605_v30 = vpop.f32.mrb[6].mxu0  ;;  %v2697_v21 = vpop.f32.mrb[6].mxu1 }
 0x1e2   : > { %v1024_v31 = vadd.f32 %v2605_v30, %v3825_v11  ;;  %v1015_v32 = vpop.f32.mrb[7].mxu0  ;;  %v1513_v34 = vmax.f32 %v1021_v27, 0.0  ;;  %v1381_v27 = vadd.f32 %v3825_v11, %v1380_v19  ;;  %v1392_v28 = vadd.f32 %v2697_v21, %v3825_v11 }
 0x1e3   : > { %v1016_v33 = vadd.f32 %v3825_v11, %v1015_v32  ;;  %v1511_v36 = vmax.f32 %v1013_v29, 0.0  ;;  %v1383_v29 = vpop.f32.mrb[7].mxu1 }
 0x1e4   : > { %v1514_v35 = vmax.f32 %v1024_v31, 0.0  ;;  %v1384_v32 = vadd.f32 %v3825_v11, %v1383_v29 }
 0x1e5   : > { %v1512_v37 = vmax.f32 %v1016_v33, 0.0 }
 0x1e6   : > { %v3839_v38 = vpack.c.bf16 %v1514_v35, %v1513_v34  ;;  %v1605_v35 = vmax.f32 %v1389_v26, 0.0 }
 0x1e7   : > { %v3841_v39 = vpack.c.bf16 %v1512_v37, %v1511_v36  ;;  %v2608_v40 = vpop.f32.mrb[8].mxu0  ;;  %v1603_v36 = vmax.f32 %v1381_v27, 0.0  ;;  %v1606_v37 = vmax.f32 %v1392_v28, 0.0 }
 0x1e8   : > { %v1037_v41 = vadd.f32 %v2608_v40, %v3825_v11  ;;  %v1028_v42 = vpop.f32.mrb[9].mxu0 }
 0x1e9   : > { %v1029_v43 = vadd.f32 %v3825_v11, %v1028_v42  ;;  %v2609_v44 = vpop.f32.mrb[10].mxu0  ;;  %v1604_v42 = vmax.f32 %v1384_v32, 0.0 }
 0x1ea   : > { %v1040_v45 = vadd.f32 %v2609_v44, %v3825_v11  ;;  %v1031_v46 = vpop.f32.mrb[11].mxu0  ;;  %v1517_v48 = vmax.f32 %v1037_v41, 0.0  ;;  %v3875_v44 = vpack.c.bf16 %v1606_v37, %v1605_v35 }
 0x1eb   : > { %v1032_v47 = vadd.f32 %v3825_v11, %v1031_v46  ;;  %v1515_v51 = vmax.f32 %v1029_v43, 0.0 }
 0x1ec   : > { %v1518_v49 = vmax.f32 %v1040_v45, 0.0 }
 0x1ed   : > { %v1516_v52 = vmax.f32 %v1032_v47, 0.0  ;;  %v3877_v47 = vpack.c.bf16 %v1604_v42, %v1603_v36 }
 0x1ee   : > { %v3847_v54 = vpack.c.bf16 %v1518_v49, %v1517_v48  ;;  %v2700_v48 = vpop.f32.mrb[8].mxu1 }
 0x1ef   : > { %v3849_v56 = vpack.c.bf16 %v1516_v52, %v1515_v51  ;;  %v2612_v57 = vpop.f32.mrb[12].mxu0  ;;  %v1396_v51 = vpop.f32.mrb[9].mxu1  ;;  %v1405_v58 = vadd.f32 %v2700_v48, %v3825_v11 }
 0x1f0   : > { %v1053_v62 = vadd.f32 %v2612_v57, %v3825_v11  ;;  %v1044_v63 = vpop.f32.mrb[13].mxu0  ;;  %v2701_v53 = vpop.f32.mrb[10].mxu1  ;;  %v1397_v59 = vadd.f32 %v3825_v11, %v1396_v51 }
 0x1f1   : > { %v1045_v1 = vadd.f32 %v3825_v11, %v1044_v63  ;;  %v2613_v2 = vpop.f32.mrb[14].mxu0  ;;  %v1408_v60 = vadd.f32 %v2701_v53, %v3825_v11  ;;  %v1399_v61 = vpop.f32.mrb[11].mxu1  ;;  %v1609_v3 = vmax.f32 %v1405_v58, 0.0 }
 0x1f2   : > { %v1056_v6 = vadd.f32 %v2613_v2, %v3825_v11  ;;  %v1047_v7 = vpop.f32.mrb[15].mxu0  ;;  %v1521_v13 = vmax.f32 %v1053_v62, 0.0  ;;  %v1400_v0 = vadd.f32 %v3825_v11, %v1399_v61  ;;  %v1607_v4 = vmax.f32 %v1397_v59, 0.0 }
 0x1f3   : > { %v1048_v10 = vadd.f32 %v3825_v11, %v1047_v7  ;;  %v1519_v17 = vmax.f32 %v1045_v1, 0.0  ;;  %v1610_v5 = vmax.f32 %v1408_v60, 0.0 }
 0x1f4   : > { %v1522_v14 = vmax.f32 %v1056_v6, 0.0  ;;  %v1608_v8 = vmax.f32 %v1400_v0, 0.0 }
 0x1f5   : > { %v1520_v18 = vmax.f32 %v1048_v10, 0.0 }
 0x1f6   : > { %v3863_v20 = vpack.c.bf16 %v1522_v14, %v1521_v13  ;;  %v3888_v13 = vpack.c.bf16 %v1610_v5, %v1609_v3 }
 0x1f7   : > { %v3865_v22 = vpack.c.bf16 %v1520_v18, %v1519_v17  ;;  %v2616_v23 = vpop.f32.mrb[16].mxu0  ;;  %v3890_v17 = vpack.c.bf16 %v1608_v8, %v1607_v4  ;;  %v2704_v18 = vpop.f32.mrb[12].mxu1 }
 0x1f8   : > { %v1069_v30 = vadd.f32 %v2616_v23, %v3825_v11  ;;  %v1060_v31 = vpop.f32.mrb[17].mxu0  ;;  %v1412_v23 = vpop.f32.mrb[13].mxu1  ;;  %v1421_v29 = vadd.f32 %v2704_v18, %v3825_v11 }
 0x1f9   : > { %v1061_v33 = vadd.f32 %v3825_v11, %v1060_v31  ;;  %v2617_v34 = vpop.f32.mrb[18].mxu0  ;;  %v2705_v27 = vpop.f32.mrb[14].mxu1 }
 0x1fa   : > { %v1072_v40 = vadd.f32 %v2617_v34, %v3825_v11  ;;  %v1063_v41 = vpop.f32.mrb[19].mxu0  ;;  %v1525_v45 = vmax.f32 %v1069_v30, 0.0  ;;  %v1413_v30 = vadd.f32 %v3825_v11, %v1412_v23  ;;  %v1424_v31 = vadd.f32 %v2705_v27, %v3825_v11  ;;  %v1415_v32 = vpop.f32.mrb[15].mxu1 }
 0x1fb   : > { %v1064_v43 = vadd.f32 %v3825_v11, %v1063_v41  ;;  %v1523_v49 = vmax.f32 %v1061_v33, 0.0  ;;  %v1416_v35 = vadd.f32 %v3825_v11, %v1415_v32 }
 0x1fc   : > { %v1526_v46 = vmax.f32 %v1072_v40, 0.0  ;;  %v1611_v40 = vmax.f32 %v1413_v30, 0.0  ;;  %v1614_v41 = vmax.f32 %v1424_v31, 0.0 }
 0x1fd   : > { %v1524_v50 = vmax.f32 %v1064_v43, 0.0 }
 0x1fe   : > { %v1644_v52 = vpack.c.bf16 %v1526_v46, %v1525_v45  ;;  %v1612_v45 = vmax.f32 %v1416_v35, 0.0 }
 0x1ff   : > { %v1643_v55 = vpack.c.bf16 %v1524_v50, %v1523_v49  ;;  %v2620_v57 = vpop.f32.mrb[20].mxu0 }
 0x200   : > { %v1085_v62 = vadd.f32 %v2620_v57, %v3825_v11  ;;  %v1076_v63 = vpop.f32.mrb[21].mxu0  ;;  %v3904_v51 = vpack.c.bf16 %v1612_v45, %v1611_v40 }
 0x201   : > { %v1077_v1 = vadd.f32 %v3825_v11, %v1076_v63  ;;  %v2621_v2 = vpop.f32.mrb[22].mxu0  ;;  %2476 = vmatprep.subr.bf16.mxu1 %v1643_v55 }
 0x202   : > { %v1088_v6 = vadd.f32 %v2621_v2, %v3825_v11  ;;  %v1079_v7 = vpop.f32.mrb[23].mxu0  ;;  %2477 = vmatpush3.bf16.msra.mxu1 %v3833_v25  ;;  %v1529_v14 = vmax.f32 %v1085_v62, 0.0 }
 0x203   : > { %v1080_v10 = vadd.f32 %v3825_v11, %v1079_v7  ;;  %2478 = vmatprep.subr.bf16.mxu1 %v1644_v52  ;;  %v1527_v19 = vmax.f32 %v1077_v1, 0.0  ;;  %v2708_v52 = vpop.f32.mrb[16].mxu1 }
 0x204   : > { %v1530_v16 = vmax.f32 %v1088_v6, 0.0  ;;  %v1428_v57 = vpop.f32.mrb[17].mxu1  ;;  %v1437_v61 = vadd.f32 %v2708_v52, %v3825_v11 }
 0x205   : > { %v1528_v21 = vmax.f32 %v1080_v10, 0.0  ;;  %v2709_v59 = vpop.f32.mrb[18].mxu1  ;;  %v1429_v62 = vadd.f32 %v3825_v11, %v1428_v57 }
 0x206   : > { %v1646_v26 = vpack.c.bf16 %v1530_v16, %v1529_v14  ;;  %2479 = vmatpush3.bf16.msra.mxu1 %v3831_v24  ;;  %v1613_v24 = vmax.f32 %v1421_v29, 0.0  ;;  %v1440_v63 = vadd.f32 %v2709_v59, %v3825_v11  ;;  %v1431_v0 = vpop.f32.mrb[19].mxu1 }
 0x207   : > { %v1645_v28 = vpack.c.bf16 %v1528_v21, %v1527_v19  ;;  %v2624_v25 = vpop.f32.mrb[24].mxu0  ;;  %v1432_v3 = vadd.f32 %v3825_v11, %v1431_v0  ;;  %v1615_v6 = vmax.f32 %v1429_v62, 0.0  ;;  %v2712_v19 = vpop.f32.mrb[20].mxu1 }
 0x208   : > { %v1101_v33 = vadd.f32 %v2624_v25, %v3825_v11  ;;  %v1092_v34 = vpop.f32.mrb[25].mxu0  ;;  %v3902_v48 = vpack.c.bf16 %v1614_v41, %v1613_v24  ;;  %v1618_v7 = vmax.f32 %v1440_v63, 0.0  ;;  %v1453_v27 = vadd.f32 %v2712_v19, %v3825_v11 }
 0x209   : > { %v1093_v36 = vadd.f32 %v3825_v11, %v1092_v34  ;;  %v2625_v37 = vpop.f32.mrb[26].mxu0  ;;  %2480 = vmatprep.subr.bf16.mxu1 %v1645_v28  ;;  %v1616_v14 = vmax.f32 %v1432_v3, 0.0  ;;  %v1444_v28 = vpop.f32.mrb[21].mxu1 }
 0x20a   : > { %v1104_v42 = vadd.f32 %v2625_v37, %v3825_v11  ;;  %v1095_v43 = vpop.f32.mrb[27].mxu0  ;;  %2481 = vmatpush3.bf16.msra.mxu1 %v3841_v39  ;;  %v1533_v49 = vmax.f32 %v1101_v33, 0.0  ;;  %v1445_v30 = vadd.f32 %v3825_v11, %v1444_v28  ;;  %v2713_v31 = vpop.f32.mrb[22].mxu1  ;;  %v1621_v32 = vmax.f32 %v1453_v27, 0.0 }
 0x20b   : > { %v1096_v46 = vadd.f32 %v3825_v11, %v1095_v43  ;;  %2482 = vmatprep.subr.bf16.mxu1 %v1646_v26  ;;  %v1531_v53 = vmax.f32 %v1093_v36, 0.0  ;;  %v3918_v26 = vpack.c.bf16 %v1616_v14, %v1615_v6  ;;  %v1456_v33 = vadd.f32 %v2713_v31, %v3825_v11  ;;  %v1447_v34 = vpop.f32.mrb[23].mxu1 }
 0x20c   : > { %v1534_v50 = vmax.f32 %v1104_v42, 0.0  ;;  %v1619_v37 = vmax.f32 %v1445_v30, 0.0  ;;  %v1448_v24 = vadd.f32 %v3825_v11, %v1447_v34  ;;  %v2716_v57 = vpop.f32.mrb[24].mxu1 }
 0x20d   : > { %v1532_v55 = vmax.f32 %v1096_v46, 0.0  ;;  %v1622_v42 = vmax.f32 %v1456_v33, 0.0 }
 0x20e   : > { %v1648_v58 = vpack.c.bf16 %v1534_v50, %v1533_v49  ;;  %2483 = vmatpush3.bf16.msra.mxu1 %v3839_v38  ;;  %v1617_v38 = vmax.f32 %v1437_v61, 0.0  ;;  %v1620_v46 = vmax.f32 %v1448_v24, 0.0 }
 0x20f   : > { %v1647_v60 = vpack.c.bf16 %v1532_v55, %v1531_v53  ;;  %v2628_v39 = vpop.f32.mrb[28].mxu0  ;;  %v3929_v50 = vpack.c.bf16 %v1622_v42, %v1621_v32  ;;  %v3933_v53 = vld [vmem:[%s3732_s30 + $0x8] sm:$0xff] }
 0x210   : > { %v1117_v1 = vadd.f32 %v2628_v39, %v3825_v11  ;;  %v1108_v2 = vpop.f32.mrb[29].mxu0  ;;  %v3916_v18 = vpack.c.bf16 %v1618_v7, %v1617_v38  ;;  %v3935_v55 = vpack.c.bf16 %v1620_v46, %v1619_v37  ;;  %v1460_v39 = vpop.f32.mrb[25].mxu1 }
 0x211   : > { %v1109_v4 = vadd.f32 %v3825_v11, %v1108_v2  ;;  %v2629_v5 = vpop.f32.mrb[30].mxu0  ;;  %2484 = vmatprep.subr.bf16.mxu1 %v1647_v60  ;;  %v1469_v60 = vadd.f32 %v2716_v57, %v3825_v11  ;;  %v1461_v63 = vadd.f32 %v3825_v11, %v1460_v39  ;;  %v2717_v0 = vpop.f32.mrb[26].mxu1  ;;  %v2374_v2 = vcombine.high %v3933_v53, %v3933_v53 }
 0x212   : > { %v1120_v8 = vadd.f32 %v2629_v5, %v3825_v11  ;;  %v1111_v10 = vpop.f32.mrb[31].mxu0  ;;  %2485 = vmatpush3.bf16.msra.mxu1 %v3849_v56  ;;  %v1537_v21 = vmax.f32 %v1117_v1, 0.0  ;;  %v1463_v5 = vpop.f32.mrb[27].mxu1 }
 0x213   : > { %v1112_v16 = vadd.f32 %v3825_v11, %v1111_v10  ;;  %2486 = vmatprep.subr.bf16.mxu1 %v1648_v58  ;;  %v1535_v25 = vmax.f32 %v1109_v4, 0.0  ;;  %v1625_v3 = vmax.f32 %v1469_v60, 0.0  ;;  %v1472_v4 = vadd.f32 %v2717_v0, %v3825_v11 }
 0x214   : > { %v1538_v23 = vmax.f32 %v1120_v8, 0.0  ;;  %v1623_v7 = vmax.f32 %v1461_v63, 0.0 }
 0x215   : > { %v1536_v29 = vmax.f32 %v1112_v16, 0.0  ;;  %v1626_v14 = vmax.f32 %v1472_v4, 0.0 }
 0x216   : > { %v1650_v56 = vpack.c.bf16 %v1538_v23, %v1537_v21  ;;  %2487 = vmatpush3.bf16.msra.mxu1 %v3847_v54 }
 0x217   : > { %v1649_v35 = vpack.c.bf16 %v1536_v29, %v1535_v25  ;;  %v2632_v36 = vpop.f32.mrb[32].mxu0  ;;  %v3953_v27 = vpack.c.bf16 %v1626_v14, %v1625_v3  ;;  %v2720_v29 = vpop.f32.mrb[28].mxu1 }
 0x218   : > { %v1133_v40 = vadd.f32 %v2632_v36, %v3825_v11  ;;  %v1124_v41 = vpop.f32.mrb[33].mxu0  ;;  %v1476_v32 = vpop.f32.mrb[29].mxu1 }
 0x219   : > { %v1125_v43 = vadd.f32 %v3825_v11, %v1124_v41  ;;  %v2633_v45 = vpop.f32.mrb[34].mxu0  ;;  %2488 = vmatprep.subr.bf16.mxu1 %v1649_v35  ;;  %v1477_v35 = vadd.f32 %v3825_v11, %v1476_v32  ;;  %v2721_v36 = vpop.f32.mrb[30].mxu1 }
 0x21a   : > { %v1136_v54 = vadd.f32 %v2633_v45, %v3825_v11  ;;  %v1127_v49 = vpop.f32.mrb[35].mxu0  ;;  %2489 = vmatpush3.bf16.msra.mxu1 %v3865_v22  ;;  %v1541_v58 = vmax.f32 %v1133_v40, 0.0  ;;  %v2371_v22 = vcombine.low %v3818_v9, %v3818_v9  ;;  %v1464_v9 = vadd.f32 %v3825_v11, %v1463_v5  ;;  %v1479_v41 = vpop.f32.mrb[31].mxu1 }
 0x21b   : > { %v1128_v52 = vadd.f32 %v3825_v11, %v1127_v49  ;;  %2490 = vmatprep.subr.bf16.mxu1 %v1650_v56  ;;  %v1539_v61 = vmax.f32 %v1125_v43, 0.0  ;;  %v1485_v56 = vadd.f32 %v2720_v29, %v3825_v11  ;;  %v1488_v40 = vadd.f32 %v2721_v36, %v3825_v11 }
 0x21c   : > { %v1542_v59 = vmax.f32 %v1136_v54, 0.0  ;;  %v1624_v19 = vmax.f32 %v1464_v9, 0.0  ;;  %v1627_v45 = vmax.f32 %v1477_v35, 0.0  ;;  %v1480_v46 = vadd.f32 %v3825_v11, %v1479_v41 }
 0x21d   : > { %v1540_v62 = vmax.f32 %v1128_v52, 0.0  ;;  %v1629_v24 = vmax.f32 %v1485_v56, 0.0  ;;  %v1630_v52 = vmax.f32 %v1488_v40, 0.0 }
 0x21e   : > { %v3941_v1 = vpack.c.bf16 %v1542_v59, %v1541_v58  ;;  %2491 = vmatpush3.bf16.msra.mxu1 %v3863_v20  ;;  %v3956_v25 = vpack.c.bf16 %v1624_v19, %v1623_v7  ;;  %v1628_v59 = vmax.f32 %v1480_v46, 0.0 }
 0x21f   : > { %v3947_v38 = vpack.c.bf16 %v1540_v62, %v1539_v61  ;;  %v2636_v6 = vpop.f32.mrb[36].mxu0  ;;  %v3969_v61 = vpack.c.bf16 %v1630_v52, %v1629_v24 }
 0x220   : > { %v1149_v8 = vadd.f32 %v2636_v6, %v3825_v11  ;;  %v1140_v10 = vpop.f32.mrb[37].mxu0 }
 0x221   : > { %v1141_v16 = vadd.f32 %v3825_v11, %v1140_v10  ;;  %v2637_v20 = vpop.f32.mrb[38].mxu0  ;;  %1765 = vmatmul.mubr.bf16.vlgmr.msra.gmra.mrb[36].mxu1 %v2371_v22  ;;  %v3972_v22 = vpack.c.bf16 %v1628_v59, %v1627_v45 }
 0x222   : > { %v1152_v21 = vadd.f32 %v2637_v20, %v3825_v11  ;;  %v1143_v23 = vpop.f32.mrb[39].mxu0  ;;  %1804 = vmatprep.mubr.bf16.mxu1 %v2374_v2  ;;  %v1545_v30 = vmax.f32 %v1149_v8, 0.0  ;;  %v2724_v2 = vpop.f32.mrb[32].mxu1 }
 0x223   : > { %v1144_v28 = vadd.f32 %v3825_v11, %v1143_v23  ;;  %v1543_v33 = vmax.f32 %v1141_v16, 0.0  ;;  %v1501_v5 = vadd.f32 %v2724_v2, %v3825_v11  ;;  %v1492_v6 = vpop.f32.mrb[33].mxu1 }
 0x224   : > { %v1546_v31 = vmax.f32 %v1152_v21, 0.0  ;;  %v1493_v9 = vadd.f32 %v3825_v11, %v1492_v6  ;;  %v2725_v8 = vpop.f32.mrb[34].mxu1 }
 0x225   : > { %v1544_v34 = vmax.f32 %v1144_v28, 0.0  ;;  %v1633_v16 = vmax.f32 %v1501_v5, 0.0  ;;  %v1504_v20 = vadd.f32 %v2725_v8, %v3825_v11  ;;  %v1495_v19 = vpop.f32.mrb[35].mxu1 }
 0x226   : > { %v3960_v37 = vpack.c.bf16 %v1546_v31, %v1545_v30  ;;  %v1631_v28 = vmax.f32 %v1493_v9, 0.0  ;;  %v1496_v29 = vadd.f32 %v3825_v11, %v1495_v19 }
 0x227   : > { %v3963_v42 = vpack.c.bf16 %v1544_v34, %v1543_v33  ;;  %v2640_v43 = vpop.f32.mrb[40].mxu0  ;;  %v1634_v56 = vmax.f32 %v1504_v20, 0.0 }
 0x228   : > { %v1165_v54 = vadd.f32 %v2640_v43, %v3825_v11  ;;  %v1156_v49 = vpop.f32.mrb[41].mxu0  ;;  %v1632_v34 = vmax.f32 %v1496_v29, 0.0 }
 0x229   : > { %v1157_v57 = vadd.f32 %v3825_v11, %v1156_v49  ;;  %v2641_v58 = vpop.f32.mrb[42].mxu0  ;;  %v3986_v36 = vpack.c.bf16 %v1634_v56, %v1633_v16 }
 0x22a   : > { %v1168_v60 = vadd.f32 %v2641_v58, %v3825_v11  ;;  %v1159_v39 = vpop.f32.mrb[43].mxu0  ;;  %v1549_v63 = vmax.f32 %v1165_v54, 0.0  ;;  %v3988_v41 = vpack.c.bf16 %v1632_v34, %v1631_v28 }
 0x22b   : > { %v1160_v62 = vadd.f32 %v3825_v11, %v1159_v39  ;;  %v1547_v3 = vmax.f32 %v1157_v57, 0.0 }
 0x22c   : > { %v1550_v0 = vmax.f32 %v1168_v60, 0.0 }
 0x22d   : > { %v1548_v4 = vmax.f32 %v1160_v62, 0.0 }
 0x22e   : > { %v3975_v7 = vpack.c.bf16 %v1550_v0, %v1549_v63 }
 0x22f   : > { %v3978_v10 = vpack.c.bf16 %v1548_v4, %v1547_v3  ;;  %v2644_v14 = vpop.f32.mrb[44].mxu0 }
 0x230   : > { %v1181_v21 = vadd.f32 %v2644_v14, %v3825_v11  ;;  %v1172_v23 = vpop.f32.mrb[45].mxu0 }
 0x231   : > { %v1173_v30 = vadd.f32 %v3825_v11, %v1172_v23  ;;  %v2645_v31 = vpop.f32.mrb[46].mxu0 }
 0x232   : > { %v1184_v32 = vadd.f32 %v2645_v31, %v3825_v11  ;;  %v1175_v33 = vpop.f32.mrb[47].mxu0  ;;  %v1553_v24 = vmax.f32 %v1181_v21, 0.0 }
 0x233   : > { %v1176_v35 = vadd.f32 %v3825_v11, %v1175_v33  ;;  %v1551_v43 = vmax.f32 %v1173_v30, 0.0 }
 0x234   : > { %v1554_v40 = vmax.f32 %v1184_v32, 0.0 }
 0x235   : > { %v1552_v45 = vmax.f32 %v1176_v35, 0.0 }
 0x236   : > { %v3990_v46 = vpack.c.bf16 %v1554_v40, %v1553_v24 }
 0x237   : > { %v3992_v54 = vpack.c.bf16 %v1552_v45, %v1551_v43  ;;  %v2648_v49 = vpop.f32.mrb[48].mxu0 }
 0x238   : > { %v1197_v52 = vadd.f32 %v2648_v49, %v3825_v11  ;;  %v1188_v57 = vpop.f32.mrb[49].mxu0 }
 0x239   : > { %v1189_v58 = vadd.f32 %v3825_v11, %v1188_v57  ;;  %v2649_v59 = vpop.f32.mrb[50].mxu0 }
 0x23a   : > { %v1200_v60 = vadd.f32 %v2649_v59, %v3825_v11  ;;  %v1191_v39 = vpop.f32.mrb[51].mxu0  ;;  %v1557_v63 = vmax.f32 %v1197_v52, 0.0 }
 0x23b   : > { %v1192_v62 = vadd.f32 %v3825_v11, %v1191_v39  ;;  %v1555_v2 = vmax.f32 %v1189_v58, 0.0 }
 0x23c   : > { %v1558_v0 = vmax.f32 %v1200_v60, 0.0 }
 0x23d   : > { %v1556_v3 = vmax.f32 %v1192_v62, 0.0 }
 0x23e   : > { %v1660_v4 = vpack.c.bf16 %v1558_v0, %v1557_v63 }
 0x23f   : > { %v1659_v5 = vpack.c.bf16 %v1556_v3, %v1555_v2  ;;  %v2652_v6 = vpop.f32.mrb[52].mxu0 }
 0x240   : > { %v1213_v9 = vadd.f32 %v2652_v6, %v3825_v11  ;;  %v1204_v8 = vpop.f32.mrb[53].mxu0 }
 0x241   : > { %v1205_v14 = vadd.f32 %v3825_v11, %v1204_v8  ;;  %v2653_v16 = vpop.f32.mrb[54].mxu0  ;;  %2498 = vmatprep.subr.bf16.mxu1 %v1659_v5 }
 0x242   : > { %v1216_v20 = vadd.f32 %v2653_v16, %v3825_v11  ;;  %v1207_v19 = vpop.f32.mrb[55].mxu0  ;;  %2499 = vmatpush3.bf16.msra.mxu1 %v3947_v38  ;;  %v1561_v23 = vmax.f32 %v1213_v9, 0.0 }
 0x243   : > { %v1208_v21 = vadd.f32 %v3825_v11, %v1207_v19  ;;  %2500 = vmatprep.subr.bf16.mxu1 %v1660_v4  ;;  %v1559_v29 = vmax.f32 %v1205_v14, 0.0 }
 0x244   : > { %v1562_v28 = vmax.f32 %v1216_v20, 0.0 }
 0x245   : > { %v1560_v30 = vmax.f32 %v1208_v21, 0.0 }
 0x246   : > { %v1662_v31 = vpack.c.bf16 %v1562_v28, %v1561_v23  ;;  %2501 = vmatpush3.bf16.msra.mxu1 %v3941_v1  ;;  %v4022_v28 = vld [vmem:[%s3732_s30 + $0x10] sm:$0xff] }
 0x247   : > { %v1661_v56 = vpack.c.bf16 %v1560_v30, %v1559_v29  ;;  %v2656_v32 = vpop.f32.mrb[56].mxu0 }
 0x248   : > { %v1229_v33 = vadd.f32 %v2656_v32, %v3825_v11  ;;  %v1220_v34 = vpop.f32.mrb[57].mxu0 }
 0x249   : > { %v1221_v35 = vadd.f32 %v3825_v11, %v1220_v34  ;;  %v2657_v24 = vpop.f32.mrb[58].mxu0  ;;  %2502 = vmatprep.subr.bf16.mxu1 %v1661_v56  ;;  %v2373_v56 = vcombine.low %v3933_v53, %v3933_v53 }
 0x24a   : > { %v1232_v38 = vadd.f32 %v2657_v24, %v3825_v11  ;;  %v1223_v40 = vpop.f32.mrb[59].mxu0  ;;  %2503 = vmatpush3.bf16.msra.mxu1 %v3963_v42  ;;  %v1565_v45 = vmax.f32 %v1229_v33, 0.0  ;;  %v2376_v33 = vcombine.high %v4022_v28, %v4022_v28 }
 0x24b   : > { %v1224_v43 = vadd.f32 %v3825_v11, %v1223_v40  ;;  %2504 = vmatprep.subr.bf16.mxu1 %v1662_v31  ;;  %v1563_v1 = vmax.f32 %v1221_v35, 0.0 }
 0x24c   : > { %v1566_v49 = vmax.f32 %v1232_v38, 0.0 }
 0x24d   : > { %v1564_v52 = vmax.f32 %v1224_v43, 0.0 }
 0x24e   : > { %v1664_v57 = vpack.c.bf16 %v1566_v49, %v1565_v45  ;;  %2505 = vmatpush3.bf16.msra.mxu1 %v3960_v37 }
 0x24f   : > { %v1663_v58 = vpack.c.bf16 %v1564_v52, %v1563_v1  ;;  %v2660_v59 = vpop.f32.mrb[60].mxu0 }
 0x250   : > { %v1245_v60 = vadd.f32 %v2660_v59, %v3825_v11  ;;  %v1236_v39 = vpop.f32.mrb[61].mxu0 }
 0x251   : > { %v1237_v62 = vadd.f32 %v3825_v11, %v1236_v39  ;;  %v2661_v63 = vpop.f32.mrb[62].mxu0  ;;  %2506 = vmatprep.subr.bf16.mxu1 %v1663_v58 }
 0x252   : > { %v1248_v42 = vadd.f32 %v2661_v63, %v3825_v11  ;;  %v1239_v0 = vpop.f32.mrb[63].mxu0  ;;  %2507 = vmatpush3.bf16.msra.mxu1 %v3978_v10  ;;  %v1569_v3 = vmax.f32 %v1245_v60, 0.0 }
 0x253   : > { %v1240_v2 = vadd.f32 %v3825_v11, %v1239_v0  ;;  %2508 = vmatprep.subr.bf16.mxu1 %v1664_v57  ;;  %v1567_v37 = vmax.f32 %v1237_v62, 0.0 }
 0x254   : > { %v1570_v4 = vmax.f32 %v1248_v42, 0.0 }
 0x255   : > { %v1568_v5 = vmax.f32 %v1240_v2, 0.0 }
 0x256   : > { %v1666_v6 = vpack.c.bf16 %v1570_v4, %v1569_v3  ;;  %2509 = vmatpush3.bf16.msra.mxu1 %v3975_v7 }
 0x257   : > { %v1665_v9 = vpack.c.bf16 %v1568_v5, %v1567_v37  ;;  %v2664_v8 = vpop.f32.mrb[64].mxu0 }
 0x258   : > { %v1261_v14 = vadd.f32 %v2664_v8, %v3825_v11  ;;  %v1252_v16 = vpop.f32.mrb[65].mxu0 }
 0x259   : > { %v1253_v20 = vadd.f32 %v3825_v11, %v1252_v16  ;;  %v2665_v19 = vpop.f32.mrb[66].mxu0  ;;  %2510 = vmatprep.subr.bf16.mxu1 %v1665_v9 }
 0x25a   : > { %v1264_v10 = vadd.f32 %v2665_v19, %v3825_v11  ;;  %v1255_v21 = vpop.f32.mrb[67].mxu0  ;;  %2511 = vmatpush3.bf16.msra.mxu1 %v3992_v54  ;;  %v1573_v7 = vmax.f32 %v1261_v14, 0.0 }
 0x25b   : > { %v1256_v23 = vadd.f32 %v3825_v11, %v1255_v21  ;;  %2512 = vmatprep.subr.bf16.mxu1 %v1666_v6  ;;  %v1571_v30 = vmax.f32 %v1253_v20, 0.0 }
 0x25c   : > { %v1574_v29 = vmax.f32 %v1264_v10, 0.0 }
 0x25d   : > { %v1572_v31 = vmax.f32 %v1256_v23, 0.0 }
 0x25e   : > { %v4026_v32 = vpack.c.bf16 %v1574_v29, %v1573_v7  ;;  %2513 = vmatpush3.bf16.msra.mxu1 %v3990_v46 }
 0x25f   : > { %v4031_v54 = vpack.c.bf16 %v1572_v31, %v1571_v30  ;;  %v2668_v34 = vpop.f32.mrb[68].mxu0 }
 0x260   : > { %v1277_v35 = vadd.f32 %v2668_v34, %v3825_v11  ;;  %v1268_v24 = vpop.f32.mrb[69].mxu0 }
 0x261   : > { %v1269_v38 = vadd.f32 %v3825_v11, %v1268_v24  ;;  %v2669_v40 = vpop.f32.mrb[70].mxu0  ;;  %1805 = vmatmul.mubr.bf16.vlgmr.msra.gmra.mrb[40].mxu1 %v2373_v56 }
 0x262   : > { %v1280_v43 = vadd.f32 %v2669_v40, %v3825_v11  ;;  %v1271_v53 = vpop.f32.mrb[71].mxu0  ;;  %1844 = vmatprep.mubr.bf16.mxu1 %v2376_v33  ;;  %v1577_v46 = vmax.f32 %v1277_v35, 0.0 }
 0x263   : > { %v1272_v45 = vadd.f32 %v3825_v11, %v1271_v53  ;;  %v1575_v1 = vmax.f32 %v1269_v38, 0.0 }
 0x264   : > { %v1578_v49 = vmax.f32 %v1280_v43, 0.0 }
 0x265   : > { %v1576_v52 = vmax.f32 %v1272_v45, 0.0 }
 0x266   : > { %v4037_v57 = vpack.c.bf16 %v1578_v49, %v1577_v46 }
 0x267   : > { %v4039_v58 = vpack.c.bf16 %v1576_v52, %v1575_v1  ;;  %v2672_v59 = vpop.f32.mrb[72].mxu0 }
 0x268   : > { %v1293_v60 = vadd.f32 %v2672_v59, %v3825_v11  ;;  %v1284_v39 = vpop.f32.mrb[73].mxu0 }
 0x269   : > { %v1285_v62 = vadd.f32 %v3825_v11, %v1284_v39  ;;  %v2673_v63 = vpop.f32.mrb[74].mxu0 }
 0x26a   : > { %v1296_v42 = vadd.f32 %v2673_v63, %v3825_v11  ;;  %v1287_v0 = vpop.f32.mrb[75].mxu0  ;;  %v1581_v3 = vmax.f32 %v1293_v60, 0.0 }
 0x26b   : > { %v1288_v2 = vadd.f32 %v3825_v11, %v1287_v0  ;;  %v1579_v37 = vmax.f32 %v1285_v62, 0.0 }
 0x26c   : > { %v1582_v4 = vmax.f32 %v1296_v42, 0.0 }
 0x26d   : > { %v1580_v5 = vmax.f32 %v1288_v2, 0.0 }
 0x26e   : > { %v4045_v6 = vpack.c.bf16 %v1582_v4, %v1581_v3 }
 0x26f   : > { %v4047_v9 = vpack.c.bf16 %v1580_v5, %v1579_v37  ;;  %v2676_v8 = vpop.f32.mrb[76].mxu0 }
 0x270   : > { %v1309_v14 = vadd.f32 %v2676_v8, %v3825_v11  ;;  %v1300_v16 = vpop.f32.mrb[77].mxu0 }
 0x271   : > { %v1301_v20 = vadd.f32 %v3825_v11, %v1300_v16  ;;  %v2677_v19 = vpop.f32.mrb[78].mxu0 }
 0x272   : > { %v1312_v10 = vadd.f32 %v2677_v19, %v3825_v11  ;;  %v1303_v21 = vpop.f32.mrb[79].mxu0  ;;  %v1585_v7 = vmax.f32 %v1309_v14, 0.0 }
 0x273   : > { %v1304_v23 = vadd.f32 %v3825_v11, %v1303_v21  ;;  %v1583_v30 = vmax.f32 %v1301_v20, 0.0 }
 0x274   : > { %v1586_v29 = vmax.f32 %v1312_v10, 0.0 }
 0x275   : > { %v1584_v31 = vmax.f32 %v1304_v23, 0.0 }
 0x276   : > { %v1674_v56 = vpack.c.bf16 %v1586_v29, %v1585_v7 }
 0x277   : > { %v1673_v33 = vpack.c.bf16 %v1584_v31, %v1583_v30  ;;  %v2680_v34 = vpop.f32.mrb[80].mxu0 }
 0x278   : > { %v1325_v35 = vadd.f32 %v2680_v34, %v3825_v11  ;;  %v1316_v24 = vpop.f32.mrb[81].mxu0 }
 0x279   : > { %v1317_v38 = vadd.f32 %v3825_v11, %v1316_v24  ;;  %v2681_v40 = vpop.f32.mrb[82].mxu0 }
 0x27a   : > { %v1328_v43 = vadd.f32 %v2681_v40, %v3825_v11  ;;  %v1319_v53 = vpop.f32.mrb[83].mxu0  ;;  %v1589_v46 = vmax.f32 %v1325_v35, 0.0 }
 0x27b   : > { %v1320_v45 = vadd.f32 %v3825_v11, %v1319_v53  ;;  %v1587_v1 = vmax.f32 %v1317_v38, 0.0 }
 0x27c   : > { %v1590_v49 = vmax.f32 %v1328_v43, 0.0 }
 0x27d   : > { %v1588_v52 = vmax.f32 %v1320_v45, 0.0  ;;  %v3029_v45 = vld [vmem:[#allocation9] sm:$0xff] (!%p2379_p6)  }
 0x27e   : > { %v1676_v59 = vpack.c.bf16 %v1590_v49, %v1589_v46  ;;  %v3357_v46 = vmov (!%p2379_p6), 0.0   ;;  %v3030_v49 = vld [vmem:[#allocation9 + $0x8] sm:$0xff] (!%p2379_p6)  }
 0x27f   : > { %v1675_v60 = vpack.c.bf16 %v1588_v52, %v1587_v1  ;;  %v2684_v39 = vpop.f32.mrb[84].mxu0  ;;  %2726 = vmatprep.subr.bf16.mxu0 (!%p2379_p6), %v3357_v46  ;;  %2742 = vmatprep.mubr.msk.bf16.mxu0 (!%p2379_p6), %vm3358_vm0, %v3357_v46  ;;  %v3031_v1 = vld [vmem:[#allocation9 + $0x10] sm:$0xff] (!%p2379_p6)   ;;  %v3037_v52 = vld [vmem:[#allocation11] sm:$0xff] (!%p2379_p6)  }
 0x280   : > { %v1341_v62 = vadd.f32 %v2684_v39, %v3825_v11  ;;  %v1332_v63 = vpop.f32.mrb[85].mxu0  ;;  %2727 = vmatpush3.bf16.msra.mxu0 (!%p2379_p6), %v3029_v45  ;;  %v3033_v39 = vld [vmem:[#allocation9 + $0x20] sm:$0xff] (!%p2379_p6)  }
 0x281   : > { %v1333_v42 = vadd.f32 %v3825_v11, %v1332_v63  ;;  %v2685_v0 = vpop.f32.mrb[86].mxu0  ;;  %2520 = vmatprep.subr.bf16.mxu1 %v1675_v60  ;;  %2728 = vmatprep.subr.bf16.mxu0 (!%p2379_p6), %v3357_v46  ;;  %v3038_v60 = vld [vmem:[#allocation11 + $0x8] sm:$0xff] (!%p2379_p6)  }
 0x282   : > { %v1344_v2 = vadd.f32 %v2685_v0, %v3825_v11  ;;  %v1335_v3 = vpop.f32.mrb[87].mxu0  ;;  %2521 = vmatpush3.bf16.msra.mxu1 %v4031_v54  ;;  %v1593_v37 = vmax.f32 %v1341_v62, 0.0  ;;  %v3039_v62 = vld [vmem:[#allocation11 + $0x10] sm:$0xff] (!%p2379_p6)   ;;  %v3034_v63 = vld [vmem:[#allocation9 + $0x28] sm:$0xff] (!%p2379_p6)  }
 0x283   : > { %v1336_v4 = vadd.f32 %v3825_v11, %v1335_v3  ;;  %2522 = vmatprep.subr.bf16.mxu1 %v1676_v59  ;;  %v1591_v8 = vmax.f32 %v1333_v42, 0.0  ;;  %v3032_v59 = vld [vmem:[#allocation9 + $0x18] sm:$0xff] (!%p2379_p6)   ;;  %v3035_v0 = vld [vmem:[#allocation9 + $0x30] sm:$0xff] (!%p2379_p6)   ;;  %v3041_v3 = vld [vmem:[#allocation11 + $0x20] sm:$0xff] (!%p2379_p6)  }
 0x284   : > { %v1594_v5 = vmax.f32 %v1344_v2, 0.0  ;;  %2729 = vmatpush3.bf16.msra.mxu0 (!%p2379_p6), %v3030_v49  ;;  %v3040_v42 = vld [vmem:[#allocation11 + $0x18] sm:$0xff] (!%p2379_p6)  }
 0x285   : > { %v1592_v14 = vmax.f32 %v1336_v4, 0.0  ;;  %2730 = vmatprep.subr.bf16.mxu0 (!%p2379_p6), %v3357_v46 }
 0x286   : > { %v1678_v16 = vpack.c.bf16 %v1594_v5, %v1593_v37  ;;  %2523 = vmatpush3.bf16.msra.mxu1 %v4026_v32  ;;  %v3036_v37 = vld [vmem:[#allocation9 + $0x38] sm:$0xff] (!%p2379_p6)   ;;  %v3042_v5 = vld [vmem:[#allocation11 + $0x28] sm:$0xff] (!%p2379_p6)  }
 0x287   : > { %v1677_v20 = vpack.c.bf16 %v1592_v14, %v1591_v8  ;;  %v2688_v19 = vpop.f32.mrb[88].mxu0  ;;  %v3043_v14 = vld [vmem:[#allocation11 + $0x30] sm:$0xff] (!%p2379_p6)  }
 0x288   : > { %v1357_v10 = vadd.f32 %v2688_v19, %v3825_v11  ;;  %v1348_v21 = vpop.f32.mrb[89].mxu0  ;;  %2731 = vmatpush3.bf16.msra.mxu0 (!%p2379_p6), %v3031_v1 }
 0x289   : > { %v1349_v23 = vadd.f32 %v3825_v11, %v1348_v21  ;;  %v2689_v7 = vpop.f32.mrb[90].mxu0  ;;  %2524 = vmatprep.subr.bf16.mxu1 %v1677_v20  ;;  %2732 = vmatprep.subr.bf16.mxu0 (!%p2379_p6), %v3357_v46  ;;  %v2380_v20 = vld [vmem:[%s4250_s2 + $0x1] ss:$0 sm:$0xff] (!%p2379_p6) }
 0x28a   : > { %v1360_v54 = vadd.f32 %v2689_v7, %v3825_v11  ;;  %v1351_v29 = vpop.f32.mrb[91].mxu0  ;;  %2525 = vmatpush3.bf16.msra.mxu1 %v4039_v58  ;;  %v1597_v31 = vmax.f32 %v1357_v10, 0.0  ;;  %v2375_v58 = vcombine.low %v4022_v28, %v4022_v28 }
 0x28b   : > { %v1352_v30 = vadd.f32 %v3825_v11, %v1351_v29  ;;  %2526 = vmatprep.subr.bf16.mxu1 %v1678_v16  ;;  %v1595_v34 = vmax.f32 %v1349_v23, 0.0  ;;  %v1703_v11 = vld [vmem:[%s3732_s30 + $0x18] sm:$0xff] }
 0x28c   : > { %v1598_v32 = vmax.f32 %v1360_v54, 0.0  ;;  %v2378_v40 = vcombine.high %v1703_v11, %v1703_v11  ;;  %2733 = vmatpush3.bf16.msra.mxu0 (!%p2379_p6), %v3032_v59  ;;  %v3044_v16 = vld [vmem:[#allocation11 + $0x38] sm:$0xff] (!%p2379_p6)  }
 0x28d   : > { %v1596_v35 = vmax.f32 %v1352_v30, 0.0  ;;  %2734 = vmatprep.subr.bf16.mxu0 (!%p2379_p6), %v3357_v46  ;;  %v2389_v30 = vld [vmem:[%s4250_s2 + $0x2] ss:$0 sm:$0xff] (!%p2379_p6) }
 0x28e   : > { %v1680_v24 = vpack.c.bf16 %v1598_v32, %v1597_v31  ;;  %2527 = vmatpush3.bf16.msra.mxu1 %v4037_v57 }
 0x28f   : > { %v1679_v38 = vpack.c.bf16 %v1596_v35, %v1595_v34 }
 0x290   : > { %2735 = vmatpush3.bf16.msra.mxu0 (!%p2379_p6), %v3033_v39 }
 0x291   : > { %2528 = vmatprep.subr.bf16.mxu1 %v1679_v38  ;;  %2736 = vmatprep.subr.bf16.mxu0 (!%p2379_p6), %v3357_v46 }
 0x292   : > { %2529 = vmatpush3.bf16.msra.mxu1 %v4047_v9 }
 0x293   : > { %2530 = vmatprep.subr.bf16.mxu1 %v1680_v24 }
 0x294   : > { %2737 = vmatpush3.bf16.msra.mxu0 (!%p2379_p6), %v3034_v63 }
 0x295   : > { %2738 = vmatprep.subr.bf16.mxu0 (!%p2379_p6), %v3357_v46 }
 0x296   : > { %2531 = vmatpush3.bf16.msra.mxu1 %v4045_v6 }
 0x297   : > { %2532 = vmatprep.subr.bf16.mxu1 %v3861_v15 }
 0x298   : > { %2739 = vmatpush3.bf16.msra.mxu0 (!%p2379_p6), %v3035_v0 }
 0x299   : > { %2740 = vmatprep.subr.bf16.mxu0 (!%p2379_p6), %v3357_v46 }
 0x29a   : > { %2533 = vmatpush3.bf16.msra.mxu1 %v1673_v33 }
 0x29b   : > { %2534 = vmatprep.subr.bf16.mxu1 %v3859_v12  ;;  %v2377_v12 = vcombine.low %v1703_v11, %v1703_v11 }
 0x29c   : > { %2741 = vmatpush3.bf16.msra.mxu0 (!%p2379_p6), %v3036_v37 }
 0x29e   : > { %2535 = vmatpush3.bf16.msra.mxu1 %v1674_v56  ;;  %v1699_v56 = vld [vmem:[#allocation2] sm:$0xff] }
 0x29f   : > { %2542 = vmatprep.subr.bf16.mxu1 %v3935_v55 }
 0x2a1   : > { %1845 = vmatmul.mubr.bf16.vlgmr.msra.gmra.mrb[44].mxu1 %v2375_v58 }
 0x2a2   : > { %2543 = vmatpush3.bf16.msra.mxu1 %v3877_v47  ;;  %1884 = vmatprep.mubr.bf16.mxu1 %v2378_v40 }
 0x2a3   : > { %2544 = vmatprep.subr.bf16.mxu1 %v3929_v50 }
 0x2a6   : > { %2545 = vmatpush3.bf16.msra.mxu1 %v3875_v44 }
 0x2a7   : > { %2546 = vmatprep.subr.bf16.mxu1 %v3956_v25 }
 0x2aa   : > { %2547 = vmatpush3.bf16.msra.mxu1 %v3890_v17 }
 0x2ab   : > { %2548 = vmatprep.subr.bf16.mxu1 %v3953_v27 }
 0x2ae   : > { %2549 = vmatpush3.bf16.msra.mxu1 %v3888_v13 }
 0x2af   : > { %2550 = vmatprep.subr.bf16.mxu1 %v3972_v22 }
 0x2b2   : > { %2551 = vmatpush3.bf16.msra.mxu1 %v3904_v51 }
 0x2b3   : > { %2552 = vmatprep.subr.bf16.mxu1 %v3969_v61 }
 0x2b6   : > { %2553 = vmatpush3.bf16.msra.mxu1 %v3902_v48 }
 0x2b7   : > { %2554 = vmatprep.subr.bf16.mxu1 %v3988_v41 }
 0x2ba   : > { %2555 = vmatpush3.bf16.msra.mxu1 %v3918_v26 }
 0x2bb   : > { %2556 = vmatprep.subr.bf16.mxu1 %v3986_v36 }
 0x2be   : > { %2557 = vmatpush3.bf16.msra.mxu1 %v3916_v18 }
 0x2bf   : > { %2746 = vmatprep.subr.bf16.mxu1 (!%p2379_p6), %v3357_v46 }
 0x2c1   : > { %1885 = vmatmul.mubr.bf16.vlgmr.msra.gmra.mrb[48].mxu1 %v2377_v12 }
 0x2c2   : > { %2762 = vmatprep.mubr.msk.bf16.mxu1 (!%p2379_p6), %vm3358_vm0, %v3357_v46  ;;  %2747 = vmatpush3.bf16.msra.mxu1 (!%p2379_p6), %v3037_v52 }
 0x2c3   : > { %2748 = vmatprep.subr.bf16.mxu1 (!%p2379_p6), %v3357_v46 }
 0x2c6   : > { %2749 = vmatpush3.bf16.msra.mxu1 (!%p2379_p6), %v3038_v60 }
 0x2c7   : > { %2750 = vmatprep.subr.bf16.mxu1 (!%p2379_p6), %v3357_v46 }
 0x2ca   : > { %2751 = vmatpush3.bf16.msra.mxu1 (!%p2379_p6), %v3039_v62 }
 0x2cb   : > { %2752 = vmatprep.subr.bf16.mxu1 (!%p2379_p6), %v3357_v46 }
 0x2ce   : > { %2753 = vmatpush3.bf16.msra.mxu1 (!%p2379_p6), %v3040_v42 }
 0x2cf   : > { %2754 = vmatprep.subr.bf16.mxu1 (!%p2379_p6), %v3357_v46 }
 0x2d2   : > { %2755 = vmatpush3.bf16.msra.mxu1 (!%p2379_p6), %v3041_v3 }
 0x2d3   : > { %2756 = vmatprep.subr.bf16.mxu1 (!%p2379_p6), %v3357_v46 }
 0x2d6   : > { %2757 = vmatpush3.bf16.msra.mxu1 (!%p2379_p6), %v3042_v5 }
 0x2d7   : > { %2758 = vmatprep.subr.bf16.mxu1 (!%p2379_p6), %v3357_v46 }
 0x2da   : > { %2759 = vmatpush3.bf16.msra.mxu1 (!%p2379_p6), %v3043_v14 }
 0x2db   : > { %2760 = vmatprep.subr.bf16.mxu1 (!%p2379_p6), %v3357_v46 }
 0x2de   : > { %2761 = vmatpush3.bf16.msra.mxu1 (!%p2379_p6), %v3044_v16 }
 0x2f4   : > { %v2492_v15 = vpop.f32.mrb[36].mxu1 }
 0x2f5   : > { %v2493_v44 = vpop.f32.mrb[37].mxu1 }
 0x2f6   : > { %v2494_v47 = vadd.f32 %v2493_v44, %v2492_v15  ;;  %v2495_v13 = vpop.f32.mrb[38].mxu1 }
 0x2f7   : > { %v2496_v17 = vpop.f32.mrb[39].mxu1 }
 0x334   : > { %v2514_v51 = vpop.f32.mrb[40].mxu1 }
 0x335   : > { %v2515_v50 = vpop.f32.mrb[41].mxu1 }
 0x336   : > { %v2516_v55 = vadd.f32 %v2515_v50, %v2514_v51  ;;  %v2517_v27 = vpop.f32.mrb[42].mxu1 }
 0x337   : > { %v2518_v48 = vpop.f32.mrb[43].mxu1 }
 0x338   : > { %v1807_v25 = vadd.f32 %v2516_v55, %v2494_v47 }
 0x374   : > { %v2536_v61 = vpop.f32.mrb[44].mxu1 }
 0x375   : > { %v2537_v22 = vpop.f32.mrb[45].mxu1 }
 0x376   : > { %v2538_v26 = vadd.f32 %v2537_v22, %v2536_v61  ;;  %v2539_v41 = vpop.f32.mrb[46].mxu1 }
 0x377   : > { %v2540_v36 = vpop.f32.mrb[47].mxu1 }
 0x378   : > { %v1847_v28 = vadd.f32 %v2538_v26, %v1807_v25 }
 0x394   : > { %v2558_v57 = vpop.f32.mrb[48].mxu1 }
 0x395   : > { %v2559_v18 = vpop.f32.mrb[49].mxu1 }
 0x396   : > { %v2560_v6 = vadd.f32 %v2559_v18, %v2558_v57  ;;  %v2561_v9 = vpop.f32.mrb[50].mxu1  ;;  %1897 = sbr.rel (%p2379_p6) target bundleno = 1369 (0x559), region = 72 }
 0x397   : > { %v2562_v33 = vpop.f32.mrb[51].mxu1 }
 0x398   : > { %v1887_v43 = vadd.f32 %v2560_v6, %v1847_v28 }
 0x39a   : > { %v1892_v53 = vadd.f32 %v1887_v43, %v1699_v56 }
 0x39c   : > { %1893 = vst [vmem:[#allocation2] sm:$0xff] %v1892_v53 }
 0x3a3   : > { %v1898_v2 = vld [vmem:[#allocation2] sm:$0xff] }
 0x3a4   : > { %v1899_v4 = vmul.f32 0.00390625, %v1898_v2 }
 0x3a6   : > { %v1900_v8 = vpack.c.bf16 %v1899_v4, %v1899_v4 }
 0x3a8   : > { %2743 = vmatmul.mubr.bf16.vlgmr.msra.gmra.mrb[0].mxu0 %v1900_v8 }
 0x47b   : > { %v2006_v19 = vpop.f32.mrb[0].mxu0 }
 0x47c   : > { %v2007_v10 = vadd.f32 %v2380_v20, %v2006_v19  ;;  %v2744_v21 = vpop.f32.mrb[1].mxu0 }
 0x47d   : > { %v2009_v23 = vpop.f32.mrb[2].mxu0 }
 0x47e   : > { %v2012_v7 = vmax.f32 %v2007_v10, 0.0  ;;  %v2745_v54 = vpop.f32.mrb[3].mxu0 }
 0x480   : > { %v2013_v29 = vpack.c.bf16 %v2012_v7, %v2012_v7 }
 0x482   : > { %2763 = vmatmul.mubr.bf16.vlgmr.msra.gmra.mrb[0].mxu1 %v2013_v29 }
 0x555   : > { %v2119_v31 = vpop.f32.mrb[0].mxu1 }
 0x556   : > { %v2120_v32 = vadd.f32 %v2389_v30, %v2119_v31  ;;  %v2764_v34 = vpop.f32.mrb[1].mxu1 }
 0x557   : > { %v2122_v35 = vpop.f32.mrb[2].mxu1 }
 0x558   : > { %2125 = vst [vmem:[%s368_s7] sm:$0xff] %v2120_v32  ;;  %v2765_v24 = vpop.f32.mrb[3].mxu1 }
 0x559 PF: > { %s4251_s24 = sld [smem:[#allocation22_spill]]  ;;  %s4253_s30 = sld [smem:[#allocation24_spill]] }
 0x55a   : > { %s4254_s3 = sld [smem:[#allocation30_spill]]  ;;  %s2140_s20 = sshll.u32 %s368_s7, 4  ;;  %s2141_s20 = int_to_ptr.vmem [resolvable:$true] %s2140_s20 }
 0x55b   : > { %s2127_s21 = scalar_lea.sflag [#allocation5], %s366_s5  ;;  %s3189_s27 = scalar_lea.vmem %s2141_s20, 128 }
 0x55c   : > { %p3190_p10 = scmp.ne.s32.totalorder %s2141_s20, %s3189_s27  ;;  %s3359_s2 = smov [#allocation12]  }
 0x55d   : > { %s3193_s18 = sshll.u32 %s3359_s2, 4  ;;  %s3194_s18 = int_to_ptr.vmem [resolvable:$false] %s3193_s18 }
 0x55e   : > { %s3195_s28 = scalar_lea.vmem %s3194_s18, 256  ;;  %p3196_p13 = scmp.lt.s32.totalorder %s2141_s20, %s3194_s18 }
 0x55f   : > { %s2399_s14 = sshll.u32 %s4251_s24, 7  ;;  %p4255_p3 = scmp.ne.s32.totalorder %s4253_s30, 0 }
 0x560   : > { %s4105_s4 = scalar_lea.hbm %s4254_s3, %s2399_s14  ;;  %p3197_p4 = scmp.lt.s32.totalorder %s3195_s28, %s3189_s27 }
 0x561   : > { %p3191_p9 = pnand %p3190_p10, %p4255_p3 }
 0x562   : > { %p3198_p2 = por %p3197_p4, %p3196_p13 }
 0x563   : > { %p3192_p1 = pneg %p3191_p9 }
 0x565   : > { %p3199_p7 = pnand %p3198_p2, %p3192_p1 }
 0x567   : > { %3202 = shalt.err (!%p3199_p7)
}
 0x568   : > { %s3203_s5 = scalar_lea.hbm %s4105_s4, 128  ;;  %s3207_s24 = scalar_lea.hbm %s4254_s3, 256 }
 0x569   : > { %p3204_p5 = scmp.ne.s32.totalorder %s4105_s4, %s3203_s5  ;;  %p3208_p12 = scmp.lt.u32.totalorder %s4105_s4, %s4254_s3 }
 0x56a   : > { %p3209_p0 = scmp.lt.u32.totalorder %s3207_s24, %s3203_s5  ;;  %p3211_p10 = scmp.lt.u32.totalorder %s3203_s5, %s4105_s4 }
 0x56b   : > { %p3205_p11 = pnand %p3204_p5, %p4255_p3 }
 0x56c   : > { %p3210_p6 = por %p3209_p0, %p3208_p12 }
 0x56d   : > { %p3206_p8 = pneg %p3205_p11 }
 0x56e   : > { %p3212_p9 = por %p3211_p10, %p3210_p6 }
 0x570   : > { %p3213_p1 = pnand %p3212_p9, %p3206_p8 }
 0x572   : > { %3216 = shalt.err (!%p3213_p1)
}
 0x573   : > { %2798 = dma.vmem_to_hbm [thread:$0]  (%p4255_p3), %s2141_s20, 128, %s4105_s4, %s2127_s21  }
 0x574 PF: > { %s4256_s12 = sld [smem:[#allocation18_spill]]  ;;  %s4257_s11 = sld [smem:[#allocation25_spill]] }
 0x575   : > { %p2828_p13 = scmp.ge.s32.totalorder %s3347_s10, 2 }
 0x57a   : > { %s2152_s27 = sand.u32 1, %s4256_s12   ;;  %p4258_p4 = scmp.ne.s32.totalorder %s4257_s11, 0 }
 0x57b   : > { %s2153_s2 = scalar_lea.sflag [#allocation5], %s2152_s27 }
 0x57c   : > { %p2818_p2 = pnand %p2828_p13, %p4258_p4 }
 0x57e   : > { %3290 = dma.done.wait (!%p2818_p2), %s2153_s2, 128  }
 0x57f   : > { %3292 = vsyncadd (!%p2818_p2), %s2153_s2, 4294967168  ;;  %s26_s10 = sadd.s32 1, %s3347_s10   ;;  %s4260_s21 = sld [smem:[#allocation19_spill]] }
 0x580   : > { %p4133_p7 = scmp.ge.s32.totalorder %s26_s10, 6   ;;  %s4261_s30 = smov %s3611_s22 }
 0x581   : > { %s4262_s27 = sld [smem:[#allocation20_spill]]  ;;  %s4263_s22 = smov %s3303_s23 }
 0x582   : > { %s4264_s23 = smov %s4261_s30  ;;  %s4265_s24 = smov %s3311_s25 }
 0x583   : > { %s4266_s25 = smov %s3315_s26  ;;  %s4267_s26 = smov %s3668_s6 }
 0x584   : > { %s4268_s28 = smov %s3327_s29  ;;  %s4269_s29 = smov %s3614_s13 }
 0x585   : > { %s4270_s30 = smov %s3339_s8  ;;  %s4271_s7 = smov %s3343_s9 }
 0x586   : > { %s4272_s8 = smov %s4275_s19  ;;  %s4273_s9 = smov %s4279_s17 }
 0x587   :  { %25 = sbr.rel (!%p4133_p7) target bundleno = 19 (0x13), region = 122 }
 0x58e   :  { %2158 = vsyncpa [#allocation4], 1 }
 0x58f   :  { %2160 = vsyncpa [#allocation4 + $0x1], 1 }
 0x590   :  { %2161 = vsyncpa [#allocation7], 1 }
 0x591   :  { %2163 = vsyncpa [#allocation7 + $0x1], 1 }
 0x592   :  { %2164 = vsyncpa [#allocation10], 1 }
 0x593   :  { %2165 = vsyncpa [#allocation5], 1 }
 0x594   :  { %2167 = vsyncpa [#allocation5 + $0x1], 1 }

</bundles_post_ra>
